<compile_context>
chip_gen: v7x
topology: tpu7x:2x2x1
jax: 0.10.0
libtpu: 0.0.40
codegen_flags: <defaults>
</compile_context>

<pallas_src>
import numpy as np
import jax
import jax.numpy as jnp
from jax import lax
from jax.experimental import pallas as pl
from jax.experimental.pallas import tpu as pltpu  # noqa: F401  (kept for completeness)


# ----------------------------------------------------------------------------
# One-time parameter re-layout (hoisted out of the per-call jit path)
# ----------------------------------------------------------------------------
def prepare_adaconv2d_params(weights, biases, k):
    """weights: (C_out, C_in, k*k, k, k); biases: (C_out, C_in, k*k).

    Returns:
      w_aug: (C_out*R, R+1) f32 — stacked block-diagonal firstConv matrices,
             one (R, R) block-diag per oc, with the bias as an extra column
             (contracted against the ones-row of the patch matrix).
      s_sum: (C_out, C_out*R) f32 — group-sum matrix for the adaptive-tap
             reduce (ones over each oc's R rows).
    """
    C_out, C_in, kk = weights.shape[0], weights.shape[1], weights.shape[2]
    R = C_in * kk
    # Patch row t = p*k + q is the tap xp[y+p, x+q]; the adaptive sum pairs
    # that tap with firstConv channel ch = k*q + p  =>  perm[t] = k*(t%k) + t//k.
    perm = np.array([k * (t % k) + t // k for t in range(kk)], dtype=np.int32)
    w_perm = weights[:, :, perm, :, :].reshape(C_out, C_in, kk, kk).astype(jnp.float32)
    eye = jnp.eye(C_in, dtype=jnp.float32)
    # Block-diagonal over ic: (C_out, R, R); rows = conv rows, cols = patch rows.
    w_blk = jnp.einsum('oitq,ij->oitjq', w_perm, eye).reshape(C_out, R, R)
    b_col = biases[:, :, perm].reshape(C_out, R, 1).astype(jnp.float32)
    w_aug = jnp.concatenate([w_blk, b_col], axis=-1).reshape(C_out * R, R + 1)
    # Group-sum reduce matrix: s_sum[oc, row] = 1 if row // R == oc.
    s_sum = jnp.asarray(np.kron(np.eye(C_out, dtype=np.float32),
                                np.ones((1, R), dtype=np.float32)))
    return w_aug, s_sum


# ----------------------------------------------------------------------------
# Pallas forward
# ----------------------------------------------------------------------------
def adaconv2d_pallas(x, w_aug, s_sum, k):
    """x: (B, C_in, H, W) f32; (w_aug, s_sum) from prepare_adaconv2d_params."""
    B, C_in, H, W = x.shape
    kk = k * k
    r = k // 2
    HW = H * W
    BHW = B * HW
    R = C_in * kk
    C_out = s_sum.shape[0]

    # ---- wrapper-side layout plumbing (depends on x, stays in the jit) ------
    # im2col: patch row ic*kk + (p*k+q) at lane b*HW + y*W + x is xp[b,ic,y+p,x+q].
    xp = jnp.pad(x, ((0, 0), (0, 0), (r, r), (r, r)))
    taps = jnp.stack([xp[:, :, p:p + H, q:q + W]
                      for p in range(k) for q in range(k)], axis=2)   # (B, C_in, kk, H, W)
    patches = taps.reshape(B, R, HW).astype(jnp.float32)
    # Fold batch into the lane axis -> (R, B*HW); append the affine ones-row.
    p_fold = jnp.transpose(patches, (1, 0, 2)).reshape(R, BHW)
    p_aug = jnp.concatenate([p_fold, jnp.ones((1, BHW), jnp.float32)], axis=0)  # (R+1, BHW)
    # Taps repeated per output channel for the elementwise adaptive multiply.
    p_rep = jnp.tile(p_fold, (C_out, 1))                                        # (C_out*R, BHW)

    # ---- kernel: one invocation, everything resident in VMEM (~0.5 MiB) -----
    def kernel(p_ref, prep_ref, w_ref, s_ref, o_ref):
        # Fused firstConv for all (oc, ic): one MXU dot, bias via the ones-row.
        conv = jnp.dot(w_ref[...], p_ref[...],
                       preferred_element_type=jnp.float32,
                       precision=lax.Precision.HIGHEST)        # (C_out*R, BHW)
        g = jnp.tanh(conv)                                     # EUP — critical unit
        prod = prep_ref[...] * g                               # VPU, (C_out*R, BHW)
        # Adaptive-tap group reduce on the (idle) MXU -> one dense (C_out, BHW) store.
        o_ref[...] = jnp.dot(s_ref[...], prod,
                             preferred_element_type=jnp.float32,
                             precision=lax.Precision.HIGHEST)

    out_flat = pl.pallas_call(
        kernel,
        out_shape=jax.ShapeDtypeStruct((C_out, BHW), jnp.float32),
        # No grid / no BlockSpecs: single step, whole arrays DMA'd to VMEM once.
        # (Single-TC v5e/v6e: avoids per-step overhead; v7x: at this size one
        #  slightly larger step beats splitting 2 tiny steps across cores.)
    )(p_aug, p_rep, w_aug, s_sum)

    return jnp.transpose(out_flat.reshape(C_out, B, HW), (1, 0, 2)).reshape(B, C_out, H, W)


# ----------------------------------------------------------------------------
# Pure-JAX reference mirroring the PyTorch forward exactly
# ----------------------------------------------------------------------------
def _dynamic_kernel_ref(x1, Wk, bk, k):
    """x1: (B, 1, H, W); Wk: (k*k, 1, k, k); bk: (k*k,)."""
    r = k // 2
    B, _, H, W = x1.shape
    x_tmp = jnp.pad(x1, ((0, 0), (0, 0), (r, r), (r, r)))
    first_conv = lax.conv_general_dilated(
        x_tmp, Wk, window_strides=(1, 1), padding=((r, r), (r, r)),
        dimension_numbers=("NCHW", "OIHW", "NCHW"),
        precision=lax.Precision.HIGHEST,
    ) + bk[None, :, None, None]
    S = H + k - 1
    out = jnp.zeros((B, 1, S, S), jnp.float32)
    for i in range(k):
        for j in range(k):
            shifted = jnp.pad(x1, ((0, 0), (0, 0), (k - 1 - j, j), (k - 1 - i, i)))
            out = out + shifted * jnp.tanh(first_conv[:, k * i + j:k * i + j + 1, :, :])
    return out[:, :, r:-r, r:-r]


def adaconv2d_ref(x, weights, biases, k):
    B, C_in, H, W = x.shape
    C_out = weights.shape[0]
    cols = []
    for oc in range(C_out):
        acc = jnp.zeros((B, 1, H, W), jnp.float32)
        for ic in range(C_in):
            acc = acc + _dynamic_kernel_ref(
                x[:, ic:ic + 1], weights[oc, ic][:, None, :, :], biases[oc, ic], k)
        cols.append(acc)
    return jnp.concatenate(cols, axis=1)


# ----------------------------------------------------------------------------
if __name__ == "__main__":
    # AdaConv2d(n_inputs=4, n_outputs=3, kernel_size=3, batch_size=2, img_size=16)
    B, C_in, C_out, H, k = 2, 4, 3, 16, 3

    key = jax.random.PRNGKey(0)
    kw, kb, kx = jax.random.split(key, 3)
    # Deterministic init matching nn.Conv2d(1, k*k, k) fan-in bound 1/sqrt(k*k).
    bound = 1.0 / float(np.sqrt(k * k))
    weights = jax.random.uniform(kw, (C_out, C_in, k * k, k, k), jnp.float32, -bound, bound)
    biases = jax.random.uniform(kb, (C_out, C_in, k * k), jnp.float32, -bound, bound)
    x = jax.random.normal(kx, (B, C_in, H, H), jnp.float32)

    # One-time weight re-layout, hoisted out of the per-call path.
    w_aug, s_sum = prepare_adaconv2d_params(weights, biases, k)
    w_aug = jax.block_until_ready(w_aug)
    s_sum = jax.block_until_ready(s_sum)

    run = jax.jit(adaconv2d_pallas, static_argnums=3)
    out = jax.block_until_ready(run(x, w_aug, s_sum, k))

    ref = adaconv2d_ref(x, weights, biases, k)
    # Tightened vs v2 (5e-4): both MXU dots now run at HIGHEST precision.
    np.testing.assert_allclose(np.asarray(out), np.asarray(ref), rtol=1e-4, atol=1e-4)

    print("KERNEL_OK")
</pallas_src>

<mosaic_0001>
module attributes {stable_mosaic.version = 11 : i64} {
  func.func @kernel(%arg0: memref<37x512xf32, #tpu.memory_space<vmem>>, %arg1: memref<108x512xf32, #tpu.memory_space<vmem>>, %arg2: memref<108x37xf32, #tpu.memory_space<vmem>>, %arg3: memref<3x108xf32, #tpu.memory_space<vmem>>, %arg4: memref<3x512xf32, #tpu.memory_space<vmem>>) attributes {dimension_semantics = [], scalar_prefetch = 0 : i64, scratch_operands = 0 : i64, tpu.core_type = #tpu.core_type<tc>} {
    %c0 = arith.constant 0 : index
    %c0_0 = arith.constant 0 : index
    %0 = vector.load %arg2[%c0, %c0_0] : memref<108x37xf32, #tpu.memory_space<vmem>>, vector<108x37xf32>
    %c0_1 = arith.constant 0 : index
    %c0_2 = arith.constant 0 : index
    %1 = vector.load %arg0[%c0_1, %c0_2] : memref<37x512xf32, #tpu.memory_space<vmem>>, vector<37x512xf32>
    %cst = arith.constant dense<0.000000e+00> : vector<108x512xf32>
    %2 = tpu.matmul %0, %1, %cst {dimension_numbers = #tpu.dot_dimension_numbers<[1], [0], [0], [1], [0, 0, 1, 1], [], []>, precision = #tpu.contract_precision<fp32>} : vector<108x37xf32>, vector<37x512xf32>, vector<108x512xf32> -> vector<108x512xf32>
    %3 = math.tanh %2 : vector<108x512xf32>
    %c0_3 = arith.constant 0 : index
    %c0_4 = arith.constant 0 : index
    %4 = vector.load %arg1[%c0_3, %c0_4] : memref<108x512xf32, #tpu.memory_space<vmem>>, vector<108x512xf32>
    %5 = arith.mulf %4, %3 : vector<108x512xf32>
    %c0_5 = arith.constant 0 : index
    %c0_6 = arith.constant 0 : index
    %6 = vector.load %arg3[%c0_5, %c0_6] : memref<3x108xf32, #tpu.memory_space<vmem>>, vector<3x108xf32>
    %cst_7 = arith.constant dense<0.000000e+00> : vector<3x512xf32>
    %7 = tpu.matmul %6, %5, %cst_7 {dimension_numbers = #tpu.dot_dimension_numbers<[1], [0], [0], [1], [0, 0, 1, 1], [], []>, precision = #tpu.contract_precision<fp32>} : vector<3x108xf32>, vector<108x512xf32>, vector<3x512xf32> -> vector<3x512xf32>
    %c0_8 = arith.constant 0 : index
    %c0_9 = arith.constant 0 : index
    %8 = vector.load %arg4[%c0_8, %c0_9] : memref<3x512xf32, #tpu.memory_space<vmem>>, vector<3x512xf32>
    tpu.vector_store %arg4[%c0_8, %c0_9], %7 {strides = array<i32>} : memref<3x512xf32, #tpu.memory_space<vmem>>, vector<3x512xf32>,
    return
  }
}

</mosaic_0001>

<bundles_post_ra>
// kernel: tile.7
= control target key start
LH: loop header
LB: loop body
LE: loop exit
PB: predicated region body
PF: predicated region fallthrough
CT: control target
= control target key end

     0   :  { %s824_s0 = inlined_call_operand.vmem [shape: f32[3,36,512], index: 0, kind: input, shape index: {}]   ;;  %s825_s1 = inlined_call_operand.vmem [shape: f32[108,512], index: 1, kind: output, shape index: {}]  }
   0x1   :  { %v2_v0 = vld [vmem:[%s824_s0] sm:$0xff]   ;;  %v272_v1 = vld [vmem:[%s824_s0 + $0x8] sm:$0xff]   ;;  %v274_v2 = vld [vmem:[%s824_s0 + $0x10] sm:$0xff]  }
   0x2   :  { %3 = vst [vmem:[%s825_s1] sm:$0xff] %v2_v0   ;;  %273 = vst [vmem:[%s825_s1 + $0x8] sm:$0xff] %v272_v1   ;;  %v276_v3 = vld [vmem:[%s824_s0 + $0x18] sm:$0xff]   ;;  %v278_v4 = vld [vmem:[%s824_s0 + $0x20] sm:$0xff]  }
   0x3   :  { %275 = vst [vmem:[%s825_s1 + $0x10] sm:$0xff] %v274_v2   ;;  %v280_v5 = vld [vmem:[%s824_s0 + $0x28] sm:$0xff]   ;;  %277 = vst [vmem:[%s825_s1 + $0x18] sm:$0xff] %v276_v3   ;;  %v282_v6 = vld [vmem:[%s824_s0 + $0x30] sm:$0xff]  }
   0x4   :  { %279 = vst [vmem:[%s825_s1 + $0x20] sm:$0xff] %v278_v4   ;;  %281 = vst [vmem:[%s825_s1 + $0x28] sm:$0xff] %v280_v5   ;;  %v284_v7 = vld [vmem:[%s824_s0 + $0x38] sm:$0xff]   ;;  %v286_v8 = vld [vmem:[%s824_s0 + $0x40] sm:$0xff]  }
   0x5   :  { %283 = vst [vmem:[%s825_s1 + $0x30] sm:$0xff] %v282_v6   ;;  %285 = vst [vmem:[%s825_s1 + $0x38] sm:$0xff] %v284_v7   ;;  %v288_v9 = vld [vmem:[%s824_s0 + $0x48] sm:$0xff]   ;;  %v290_v10 = vld [vmem:[%s824_s0 + $0x50] sm:$0xff]  }
   0x6   :  { %287 = vst [vmem:[%s825_s1 + $0x40] sm:$0xff] %v286_v8   ;;  %v292_v11 = vld [vmem:[%s824_s0 + $0x58] sm:$0xff]   ;;  %289 = vst [vmem:[%s825_s1 + $0x48] sm:$0xff] %v288_v9   ;;  %v294_v12 = vld [vmem:[%s824_s0 + $0x60] sm:$0xff]  }
   0x7   :  { %291 = vst [vmem:[%s825_s1 + $0x50] sm:$0xff] %v290_v10   ;;  %293 = vst [vmem:[%s825_s1 + $0x58] sm:$0xff] %v292_v11   ;;  %v296_v13 = vld [vmem:[%s824_s0 + $0x68] sm:$0xff]   ;;  %v298_v14 = vld [vmem:[%s824_s0 + $0x70] sm:$0xff]  }
   0x8   :  { %295 = vst [vmem:[%s825_s1 + $0x60] sm:$0xff] %v294_v12   ;;  %297 = vst [vmem:[%s825_s1 + $0x68] sm:$0xff] %v296_v13   ;;  %v300_v15 = vld [vmem:[%s824_s0 + $0x78] sm:$0xff]   ;;  %v302_v16 = vld [vmem:[%s824_s0 + $0x80] sm:$0xf]  }
   0x9   :  { %299 = vst [vmem:[%s825_s1 + $0x70] sm:$0xff] %v298_v14   ;;  %v304_v17 = vld [vmem:[%s824_s0 + $0x88] sm:$0xf]   ;;  %301 = vst [vmem:[%s825_s1 + $0x78] sm:$0xff] %v300_v15   ;;  %v306_v18 = vld [vmem:[%s824_s0 + $0x90] sm:$0xf]  }
   0xa   :  { %303 = vst [vmem:[%s825_s1 + $0x80] sm:$0xf] %v302_v16   ;;  %305 = vst [vmem:[%s825_s1 + $0x88] sm:$0xf] %v304_v17   ;;  %v308_v19 = vld [vmem:[%s824_s0 + $0x98] sm:$0xf]  }
   0xb   :  { %v310_v20 = vld [vmem:[%s824_s0 + $0xa0] sm:$0xff]   ;;  %307 = vst [vmem:[%s825_s1 + $0x90] sm:$0xf] %v306_v18   ;;  %309 = vst [vmem:[%s825_s1 + $0x98] sm:$0xf] %v308_v19   ;;  %v313_v21 = vld [vmem:[%s824_s0 + $0xa8] sm:$0xff]  }
   0xc   :  { %311 = vst [vmem:[%s825_s1 + $0x84] sm:$0xf] %v310_v20   ;;  %312 = vst [vmem:[%s825_s1 + $0x9c] sm:$0xf0] %v310_v20   ;;  %v316_v22 = vld [vmem:[%s824_s0 + $0xb0] sm:$0xff]   ;;  %v319_v23 = vld [vmem:[%s824_s0 + $0xb8] sm:$0xff]  }
   0xd   :  { %314 = vst [vmem:[%s825_s1 + $0x8c] sm:$0xf] %v313_v21   ;;  %315 = vst [vmem:[%s825_s1 + $0xa4] sm:$0xf0] %v313_v21   ;;  %v322_v24 = vld [vmem:[%s824_s0 + $0xc0] sm:$0xff]   ;;  %v325_v25 = vld [vmem:[%s824_s0 + $0xc8] sm:$0xff]  }
   0xe   :  { %317 = vst [vmem:[%s825_s1 + $0x94] sm:$0xf] %v316_v22   ;;  %318 = vst [vmem:[%s825_s1 + $0xac] sm:$0xf0] %v316_v22   ;;  %v328_v26 = vld [vmem:[%s824_s0 + $0xd0] sm:$0xff]   ;;  %v331_v27 = vld [vmem:[%s824_s0 + $0xd8] sm:$0xff]  }
   0xf   :  { %320 = vst [vmem:[%s825_s1 + $0x9c] sm:$0xf] %v319_v23   ;;  %321 = vst [vmem:[%s825_s1 + $0xb4] sm:$0xf0] %v319_v23   ;;  %v334_v28 = vld [vmem:[%s824_s0 + $0xe0] sm:$0xff]   ;;  %v337_v29 = vld [vmem:[%s824_s0 + $0xe8] sm:$0xff]  }
  0x10   :  { %323 = vst [vmem:[%s825_s1 + $0xa4] sm:$0xf] %v322_v24   ;;  %324 = vst [vmem:[%s825_s1 + $0xbc] sm:$0xf0] %v322_v24   ;;  %v340_v30 = vld [vmem:[%s824_s0 + $0xf0] sm:$0xff]   ;;  %v343_v31 = vld [vmem:[%s824_s0 + $0xf8] sm:$0xff]  }
  0x11   :  { %326 = vst [vmem:[%s825_s1 + $0xac] sm:$0xf] %v325_v25   ;;  %327 = vst [vmem:[%s825_s1 + $0xc4] sm:$0xf0] %v325_v25   ;;  %v346_v32 = vld [vmem:[%s824_s0 + $0x100] sm:$0xff]   ;;  %v349_v33 = vld [vmem:[%s824_s0 + $0x108] sm:$0xff]  }
  0x12   :  { %329 = vst [vmem:[%s825_s1 + $0xb4] sm:$0xf] %v328_v26   ;;  %330 = vst [vmem:[%s825_s1 + $0xcc] sm:$0xf0] %v328_v26   ;;  %v352_v34 = vld [vmem:[%s824_s0 + $0x110] sm:$0xff]   ;;  %v355_v35 = vld [vmem:[%s824_s0 + $0x118] sm:$0xff]  }
  0x13   :  { %332 = vst [vmem:[%s825_s1 + $0xbc] sm:$0xf] %v331_v27   ;;  %333 = vst [vmem:[%s825_s1 + $0xd4] sm:$0xf0] %v331_v27   ;;  %v358_v36 = vld [vmem:[%s824_s0 + $0x120] sm:$0xf]  }
  0x14   :  { %335 = vst [vmem:[%s825_s1 + $0xc4] sm:$0xf] %v334_v28   ;;  %336 = vst [vmem:[%s825_s1 + $0xdc] sm:$0xf0] %v334_v28   ;;  %v360_v37 = vld [vmem:[%s824_s0 + $0x128] sm:$0xf]  }
  0x15   :  { %338 = vst [vmem:[%s825_s1 + $0xcc] sm:$0xf] %v337_v29   ;;  %339 = vst [vmem:[%s825_s1 + $0xe4] sm:$0xf0] %v337_v29   ;;  %v362_v38 = vld [vmem:[%s824_s0 + $0x130] sm:$0xf]  }
  0x16   :  { %341 = vst [vmem:[%s825_s1 + $0xd4] sm:$0xf] %v340_v30   ;;  %342 = vst [vmem:[%s825_s1 + $0xec] sm:$0xf0] %v340_v30   ;;  %v364_v39 = vld [vmem:[%s824_s0 + $0x138] sm:$0xf]  }
  0x17   :  { %344 = vst [vmem:[%s825_s1 + $0xdc] sm:$0xf] %v343_v31   ;;  %345 = vst [vmem:[%s825_s1 + $0xf4] sm:$0xf0] %v343_v31   ;;  %v366_v40 = vld [vmem:[%s824_s0 + $0x140] sm:$0xff]   ;;  %v368_v41 = vld [vmem:[%s824_s0 + $0x148] sm:$0xff]  }
  0x18   :  { %347 = vst [vmem:[%s825_s1 + $0xe4] sm:$0xf] %v346_v32   ;;  %348 = vst [vmem:[%s825_s1 + $0xfc] sm:$0xf0] %v346_v32   ;;  %v370_v42 = vld [vmem:[%s824_s0 + $0x150] sm:$0xff]   ;;  %v372_v43 = vld [vmem:[%s824_s0 + $0x158] sm:$0xff]  }
  0x19   :  { %350 = vst [vmem:[%s825_s1 + $0xec] sm:$0xf] %v349_v33   ;;  %351 = vst [vmem:[%s825_s1 + $0x104] sm:$0xf0] %v349_v33   ;;  %v374_v44 = vld [vmem:[%s824_s0 + $0x160] sm:$0xff]   ;;  %v376_v45 = vld [vmem:[%s824_s0 + $0x168] sm:$0xff]  }
  0x1a   :  { %353 = vst [vmem:[%s825_s1 + $0xf4] sm:$0xf] %v352_v34   ;;  %354 = vst [vmem:[%s825_s1 + $0x10c] sm:$0xf0] %v352_v34   ;;  %v378_v46 = vld [vmem:[%s824_s0 + $0x170] sm:$0xff]   ;;  %v380_v47 = vld [vmem:[%s824_s0 + $0x178] sm:$0xff]  }
  0x1b   :  { %356 = vst [vmem:[%s825_s1 + $0xfc] sm:$0xf] %v355_v35   ;;  %357 = vst [vmem:[%s825_s1 + $0x114] sm:$0xf0] %v355_v35   ;;  %v382_v48 = vld [vmem:[%s824_s0 + $0x180] sm:$0xff]   ;;  %v384_v49 = vld [vmem:[%s824_s0 + $0x188] sm:$0xff]  }
  0x1c   :  { %359 = vst [vmem:[%s825_s1 + $0x104] sm:$0xf] %v358_v36   ;;  %361 = vst [vmem:[%s825_s1 + $0x10c] sm:$0xf] %v360_v37   ;;  %v386_v50 = vld [vmem:[%s824_s0 + $0x190] sm:$0xff]   ;;  %v388_v51 = vld [vmem:[%s824_s0 + $0x198] sm:$0xff]  }
  0x1d   :  { %363 = vst [vmem:[%s825_s1 + $0x114] sm:$0xf] %v362_v38   ;;  %365 = vst [vmem:[%s825_s1 + $0x11c] sm:$0xf] %v364_v39   ;;  %v390_v52 = vld [vmem:[%s824_s0 + $0x1a0] sm:$0xff]   ;;  %v392_v53 = vld [vmem:[%s824_s0 + $0x1a8] sm:$0xff]  }
  0x1e   :  { %367 = vst [vmem:[%s825_s1 + $0x120] sm:$0xff] %v366_v40   ;;  %369 = vst [vmem:[%s825_s1 + $0x128] sm:$0xff] %v368_v41   ;;  %v394_v54 = vld [vmem:[%s824_s0 + $0x1b0] sm:$0xff]   ;;  %v396_v55 = vld [vmem:[%s824_s0 + $0x1b8] sm:$0xff]  }
  0x1f   :  { %371 = vst [vmem:[%s825_s1 + $0x130] sm:$0xff] %v370_v42   ;;  %373 = vst [vmem:[%s825_s1 + $0x138] sm:$0xff] %v372_v43   ;;  %v398_v56 = vld [vmem:[%s824_s0 + $0x1c0] sm:$0xf]   ;;  %v400_v57 = vld [vmem:[%s824_s0 + $0x1c8] sm:$0xf]  }
  0x20   :  { %375 = vst [vmem:[%s825_s1 + $0x140] sm:$0xff] %v374_v44   ;;  %377 = vst [vmem:[%s825_s1 + $0x148] sm:$0xff] %v376_v45   ;;  %v402_v58 = vld [vmem:[%s824_s0 + $0x1d0] sm:$0xf]   ;;  %v404_v59 = vld [vmem:[%s824_s0 + $0x1d8] sm:$0xf]  }
  0x21   :  { %379 = vst [vmem:[%s825_s1 + $0x150] sm:$0xff] %v378_v46   ;;  %381 = vst [vmem:[%s825_s1 + $0x158] sm:$0xff] %v380_v47  }
  0x22   :  { %383 = vst [vmem:[%s825_s1 + $0x160] sm:$0xff] %v382_v48   ;;  %385 = vst [vmem:[%s825_s1 + $0x168] sm:$0xff] %v384_v49  }
  0x23   :  { %387 = vst [vmem:[%s825_s1 + $0x170] sm:$0xff] %v386_v50   ;;  %389 = vst [vmem:[%s825_s1 + $0x178] sm:$0xff] %v388_v51  }
  0x24   :  { %391 = vst [vmem:[%s825_s1 + $0x180] sm:$0xff] %v390_v52   ;;  %393 = vst [vmem:[%s825_s1 + $0x188] sm:$0xff] %v392_v53  }
  0x25   :  { %395 = vst [vmem:[%s825_s1 + $0x190] sm:$0xff] %v394_v54   ;;  %397 = vst [vmem:[%s825_s1 + $0x198] sm:$0xff] %v396_v55  }
  0x26   :  { %399 = vst [vmem:[%s825_s1 + $0x1a0] sm:$0xf] %v398_v56   ;;  %401 = vst [vmem:[%s825_s1 + $0x1a8] sm:$0xf] %v400_v57  }
  0x27   :  { %403 = vst [vmem:[%s825_s1 + $0x1b0] sm:$0xf] %v402_v58   ;;  %405 = vst [vmem:[%s825_s1 + $0x1b8] sm:$0xf] %v404_v59  }

// kernel: adaconv2d_pallas.1
= control target key start
LH: loop header
LB: loop body
LE: loop exit
PB: predicated region body
PF: predicated region fallthrough
CT: control target
= control target key end

     0   :  { %v7040_v3 = vmov 0.0   ;;  %vm94_vm0 = vcmask 1044480   ;;  %vm51_vm1 = vcmask 302080   ;;  %vm2688_vm2 = vcmask 883712   ;;  %s7024_s0 = inlined_call_operand.vmem [shape: f32[37,512], index: 0, kind: input, shape index: {}]   ;;  %s7025_s2 = inlined_call_operand.vmem [shape: f32[108,37], index: 2, kind: input, shape index: {}]   ;;  %s7026_s3 = inlined_call_operand.vmem [shape: f32[3,108], index: 3, kind: input, shape index: {}]   ;;  %s7027_s1 = inlined_call_operand.vmem [shape: f32[108,512], index: 1, kind: input, shape index: {}]   ;;  %s7028_s4 = inlined_call_operand.vmem [shape: f32[3,512], index: 4, kind: output, shape index: {}]  }
   0x1   :  { %v32_v0 = vld [vmem:[%s7024_s0 + $0x8] sm:$0xff]  ;;  %v34_v2 = vld [vmem:[%s7024_s0 + $0x18] sm:$0xff]  ;;  %181 = vmatprep.mubr.f32.mxu0 %v7040_v3  ;;  %1387 = vmatprep.mubr.f32.mxu1 %v7040_v3  ;;  %v31_v8 = vld [vmem:[%s7024_s0] sm:$0xff]  ;;  %vm2692_vm3 = vcmask 1043456  }
   0x2   :  { %v36_v1 = vld [vmem:[%s7024_s0 + $0x28] sm:$0xff]  ;;  %v107_v4 = vand.u32 4294901760, %v32_v0  ;;  %v38_v6 = vld [vmem:[%s7024_s0 + $0x38] sm:$0xff]  ;;  %v1313_v7 = vand.u32 4294901760, %v34_v2  ;;  %v35_v9 = vld [vmem:[%s7024_s0 + $0x20] sm:$0xff]  ;;  %v109_v11 = vand.u32 4294901760, %v31_v8 }
   0x3   :  { %v111_v5 = vand.u32 4294901760, %v36_v1  ;;  %v1317_v10 = vand.u32 4294901760, %v38_v6  ;;  %v113_v12 = vand.u32 4294901760, %v35_v9  ;;  %v33_v13 = vld [vmem:[%s7024_s0 + $0x10] sm:$0xff]  ;;  %v40_v15 = vld [vmem:[%s7024_s0 + $0x48] sm:$0xff]  ;;  %v42_v19 = vld [vmem:[%s7024_s0 + $0x58] sm:$0xff] }
   0x4   :  { %v37_v14 = vld [vmem:[%s7024_s0 + $0x30] sm:$0xff]  ;;  %v5227_v17 = vsub.f32 %v32_v0, %v107_v4  ;;  %v44_v18 = vld [vmem:[%s7024_s0 + $0x68] sm:$0xff]  ;;  %v46_v20 = vld [vmem:[%s7024_s0 + $0x78] sm:$0xff]  ;;  %v5242_v23 = vsub.f32 %v34_v2, %v1313_v7  ;;  %v1315_v27 = vand.u32 4294901760, %v33_v13  ;;  %v115_v29 = vand.u32 4294901760, %v40_v15 }
   0x5   :  { %v5225_v16 = vpack.c.bf16 %v111_v5, %v107_v4  ;;  %v5238_v21 = vsub.f32 %v36_v1, %v111_v5  ;;  %v5240_v22 = vpack.c.bf16 %v1317_v10, %v1313_v7  ;;  %v5244_v24 = vpack.c.bf16 %v113_v12, %v109_v11  ;;  %v39_v25 = vld [vmem:[%s7024_s0 + $0x40] sm:$0xff]  ;;  %v41_v35 = vld [vmem:[%s7024_s0 + $0x50] sm:$0xff]  ;;  %v48_v36 = vld [vmem:[%s7024_s0 + $0x88] sm:$0x1f] }
   0x6   :  { %v5250_v26 = vsub.f32 %v38_v6, %v1317_v10  ;;  %v1319_v28 = vand.u32 4294901760, %v37_v14  ;;  %v43_v30 = vld [vmem:[%s7024_s0 + $0x60] sm:$0xff]  ;;  %v5257_v31 = vsub.f32 %v31_v8, %v109_v11  ;;  %v119_v32 = vand.u32 4294901760, %v44_v18  ;;  %v45_v41 = vld [vmem:[%s7024_s0 + $0x70] sm:$0xff]  ;;  %v50_v42 = vld [vmem:[%s7024_s0 + $0x98] sm:$0x1f] }
   0x7   :  { %4326 = vmatprep.subr.bf16.mxu0 %v5225_v16  ;;  %4374 = vmatprep.subr.bf16.mxu1 %v5240_v22  ;;  %v1321_v33 = vand.u32 4294901760, %v42_v19  ;;  %v1325_v34 = vand.u32 4294901760, %v46_v20  ;;  %v5265_v37 = vsub.f32 %v35_v9, %v113_v12  ;;  %v5269_v39 = vsub.f32 %v33_v13, %v1315_v27  ;;  %v47_v43 = vld [vmem:[%s7024_s0 + $0x80] sm:$0x1f]  ;;  %v49_v52 = vld [vmem:[%s7024_s0 + $0x90] sm:$0x1f] }
   0x8   :  { %4328 = vmatpush1.bf16.msra.mxu0 %v5244_v24  ;;  %v5267_v38 = vpack.c.bf16 %v1319_v28, %v1315_v27  ;;  %v117_v40 = vand.u32 4294901760, %v39_v25  ;;  %v5280_v44 = vsub.f32 %v37_v14, %v1319_v28  ;;  %v5282_v45 = vpack.c.bf16 %v119_v32, %v115_v29  ;;  %v17_v57 = vld [vmem:[%s7025_s2] sm:$0xff]  ;;  %v18_v2 = vld [vmem:[%s7025_s2 + $0x8] sm:$0xff] }
   0x9   :  { %v5284_v46 = vsub.f32 %v40_v15, %v115_v29  ;;  %v5286_v47 = vpack.c.bf16 %v1325_v34, %v1321_v33  ;;  %v5289_v48 = vsub.f32 %v44_v18, %v119_v32  ;;  %v5291_v49 = vsub.f32 %v42_v19, %v1321_v33 }
   0xa   :  { %4376 = vmatpush1.bf16.msra.mxu1 %v5267_v38  ;;  %v121_v50 = vand.u32 4294901760, %v43_v30  ;;  %v1323_v51 = vand.u32 4294901760, %v41_v35  ;;  %4330 = vmatprep.subr.bf16.mxu0 %v5282_v45  ;;  %v1327_v53 = vand.u32 4294901760, %v45_v41  ;;  %v5299_v54 = vsel %vm94_vm0, %v48_v36, 0  ;;  %v19_v36 = vld [vmem:[%s7025_s2 + $0x10] sm:$0xff] }
   0xb   :  { %4378 = vmatprep.subr.bf16.mxu1 %v5286_v47  ;;  %v5302_v55 = vsel %vm94_vm0, %v50_v42, 0  ;;  %v5305_v56 = vsel %vm94_vm0, %v47_v43, 0  ;;  %v5310_v58 = vsub.f32 %v46_v20, %v1325_v34  ;;  %v5314_v60 = vsub.f32 %v39_v25, %v117_v40 }
   0xc   :  { %v5312_v59 = vpack.c.bf16 %v121_v50, %v117_v40  ;;  %v5317_v61 = vand.u32 4294901760, %v5299_v54  ;;  %v5319_v62 = vsub.f32 %v43_v30, %v121_v50  ;;  %v5321_v63 = vpack.c.bf16 %v1327_v53, %v1323_v51 }
   0xd   :  { %v5324_v0 = vand.u32 4294901760, %v5302_v55  ;;  %v5327_v1 = vand.u32 4294901760, %v5305_v56  ;;  %v5334_v4 = vsel %vm94_vm0, %v49_v52, 0  ;;  %v53_v5 = vsel %vm51_vm1, %v17_v57, 0  ;;  %v20_v57 = vld [vmem:[%s7025_s2 + $0x18] sm:$0xff] }
   0xe   :  { %4332 = vmatpush1.bf16.msra.mxu0 %v5312_v59  ;;  %v7039_v6 = vand.u32 4294901760, %v5227_v17  ;;  %v7037_v7 = vand.u32 4294901760, %v5238_v21  ;;  %4380 = vmatpush1.bf16.msra.mxu1 %v5321_v63  ;;  %v5340_v8 = vsub.f32 %v41_v35, %v1323_v51  ;;  %v5344_v9 = vand.u32 4294901760, %v5334_v4 }
   0xf   :  { %7262 = vst [vmem:[#allocation2_spill] sm:$0xff] %v5327_v1  ;;  %124 = vmatprep.subr.mxu0 %v5317_v61  ;;  %v5346_v10 = vand.u32 4294901760, %v53_v5  ;;  %v7036_v11 = vand.u32 4294901760, %v5242_v23  ;;  %1330 = vmatprep.subr.mxu1 %v5324_v0  ;;  %v7035_v14 = vand.u32 4294901760, %v5250_v26  ;;  %v56_v15 = vsel %vm51_vm1, %v18_v2, 0  ;;  %v21_v2 = vld [vmem:[%s7025_s2 + $0x20] sm:$0xff] }
  0x10   :  { %7263 = vst [vmem:[#allocation3_spill] sm:$0xff] %v5344_v9  ;;  %v339_v12 = vsub.f32 %v5227_v17, %v7039_v6  ;;  %v351_v13 = vsub.f32 %v5238_v21, %v7037_v7  ;;  %v5358_v18 = vsub.f32 %v45_v41, %v1327_v53  ;;  %v5366_v25 = vand.u32 4294901760, %v56_v15  ;;  %v23_v6 = vld [vmem:[%s7025_s2 + $0x30] sm:$0xff] }
  0x11   :  { %v5361_v19 = vsub.f32 %v53_v5, %v5346_v10  ;;  %v1545_v20 = vsub.f32 %v5242_v23, %v7036_v11  ;;  %v1557_v29 = vsub.f32 %v5250_v26, %v7035_v14  ;;  %v7034_v30 = vand.u32 4294901760, %v5257_v31 }
  0x12   :  { %126 = vmatpush1.msra.mxu0 %v5327_v1  ;;  %v340_v27 = vand.u32 4294901760, %v339_v12  ;;  %v352_v28 = vand.u32 4294901760, %v351_v13  ;;  %1332 = vmatpush1.msra.mxu1 %v5344_v9  ;;  %v5378_v34 = vsub.f32 %v56_v15, %v5366_v25  ;;  %v7030_v35 = vand.u32 4294901760, %v5265_v37 }
  0x13   :  { %v5375_v32 = vand.u32 4294901760, %v5361_v19  ;;  %v1546_v33 = vand.u32 4294901760, %v1545_v20  ;;  %v1558_v41 = vand.u32 4294901760, %v1557_v29  ;;  %v345_v42 = vsub.f32 %v5257_v31, %v7034_v30 }
  0x14   :  { %v4333_v40 = vpack.c.bf16 %v352_v28, %v340_v27  ;;  %v7029_v43 = vand.u32 4294901760, %v5269_v39  ;;  %v5391_v51 = vand.u32 4294901760, %v5378_v34  ;;  %v357_v52 = vsub.f32 %v5265_v37, %v7030_v35 }
  0x15   :  { %7264 = vst [vmem:[#allocation4_spill] sm:$0xff] %v5375_v32  ;;  %v185_v50 = vsub.f32 %v5361_v19, %v5375_v32  ;;  %v7032_v53 = vand.u32 4294901760, %v5280_v44  ;;  %v4381_v5 = vpack.c.bf16 %v1558_v41, %v1546_v33  ;;  %v346_v12 = vand.u32 4294901760, %v345_v42  ;;  %v22_v33 = vld [vmem:[%s7025_s2 + $0x28] sm:$0xff] }
  0x16   :  { %7265 = vst [vmem:[#allocation5_spill] sm:$0xff] %v5391_v51  ;;  %4334 = vmatprep.subr.bf16.mxu0 %v4333_v40  ;;  %v1551_v13 = vsub.f32 %v5269_v39, %v7029_v43  ;;  %v59_v15 = vsel %vm51_vm1, %v19_v36, 0  ;;  %v196_v27 = vsub.f32 %v5378_v34, %v5391_v51  ;;  %v358_v28 = vand.u32 4294901760, %v357_v52 }
  0x17   :  { %v186_v20 = vand.u32 4294901760, %v185_v50  ;;  %v1563_v29 = vsub.f32 %v5280_v44, %v7032_v53  ;;  %4382 = vmatprep.subr.bf16.mxu1 %v4381_v5  ;;  %v5415_v41 = vand.u32 4294901760, %v59_v15  ;;  %v62_v42 = vsel %vm51_vm1, %v20_v57, 0 }
  0x18   :  { %v1552_v40 = vand.u32 4294901760, %v1551_v13  ;;  %v65_v36 = vsel %vm51_vm1, %v21_v2, 0  ;;  %v197_v50 = vand.u32 4294901760, %v196_v27  ;;  %v4335_v52 = vpack.c.bf16 %v358_v28, %v346_v12 }
  0x19   :  { %187 = vmatmul.mubr.f32.vlgmr.msra.gmra.mrb[0].mxu0 %v186_v20  ;;  %1393 = vmatmul.mubr.f32.vlgmr.msra.gmra.mrb[0].mxu1 %v186_v20  ;;  %v1564_v43 = vand.u32 4294901760, %v1563_v29  ;;  %v5419_v35 = vand.u32 4294901760, %v62_v42  ;;  %v5424_v5 = vsub.f32 %v59_v15, %v5415_v41  ;;  %v5426_v13 = vand.u32 4294901760, %v65_v36 }
  0x1a   :  { %192 = vmatprep.mubr.f32.mxu0 %v7040_v3  ;;  %1398 = vmatprep.mubr.f32.mxu1 %v7040_v3  ;;  %v68_v57 = vsel %vm51_vm1, %v22_v33, 0  ;;  %v7031_v2 = vand.u32 4294901760, %v5284_v46  ;;  %v7033_v28 = vand.u32 4294901760, %v5289_v48  ;;  %v7275_v32 = vand.u32 4294901760, %v5340_v8 }
  0x1b   :  { %4336 = vmatpush1.bf16.msra.mxu0 %v4335_v52  ;;  %v4383_v20 = vpack.c.bf16 %v1564_v43, %v1552_v40  ;;  %v5431_v12 = vsub.f32 %v62_v42, %v5419_v35  ;;  %v5433_v27 = vand.u32 4294901760, %v68_v57  ;;  %v5437_v29 = vand.u32 4294901760, %v5424_v5 }
  0x1c   :  { %v5440_v15 = vsub.f32 %v65_v36, %v5426_v13  ;;  %v363_v33 = vsub.f32 %v5284_v46, %v7031_v2  ;;  %v7038_v52 = vand.u32 4294901760, %v5291_v49  ;;  %v375_v42 = vsub.f32 %v5289_v48, %v7033_v28 }
  0x1d   :  { %7266 = vst [vmem:[#allocation6_spill] sm:$0xff] %v5431_v12  ;;  %7267 = vst [vmem:[#allocation7_spill] sm:$0xff] %v5437_v29  ;;  %198 = vmatmul.mubr.f32.gmra.mrb[2].mxu0 %v197_v50  ;;  %1404 = vmatmul.mubr.f32.gmra.mrb[2].mxu1 %v197_v50  ;;  %v5447_v43 = vand.u32 4294901760, %v5431_v12  ;;  %v5450_v40 = vsub.f32 %v68_v57, %v5433_v27  ;;  %v7046_v36 = vand.u32 4294901760, %v5310_v58 }
  0x1e   :  { %7268 = vst [vmem:[#allocation8_spill] sm:$0xff] %v5440_v15  ;;  %4384 = vmatpush1.bf16.msra.mxu1 %v4383_v20  ;;  %203 = vmatprep.mubr.f32.mxu0 %v7040_v3  ;;  %v207_v2 = vsub.f32 %v5424_v5, %v5437_v29  ;;  %v5460_v50 = vand.u32 4294901760, %v5440_v15  ;;  %v364_v53 = vand.u32 4294901760, %v363_v33  ;;  %v1569_v57 = vsub.f32 %v5291_v49, %v7038_v52 }
  0x1f   :  { %7269 = vst [vmem:[#allocation9_spill] sm:$0xff] %v5447_v43  ;;  %7270 = vst [vmem:[#allocation10_spill] sm:$0xff] %v5450_v40  ;;  %1409 = vmatprep.mubr.f32.mxu1 %v7040_v3  ;;  %v218_v28 = vsub.f32 %v5431_v12, %v5447_v43  ;;  %v5469_v20 = vand.u32 4294901760, %v5450_v40  ;;  %v376_v30 = vand.u32 4294901760, %v375_v42  ;;  %v1581_v14 = vsub.f32 %v5310_v58, %v7046_v36 }
  0x20   :  { %7271 = vst [vmem:[#allocation11_spill] sm:$0xff] %v5460_v50  ;;  %v208_v11 = vand.u32 4294901760, %v207_v2  ;;  %v229_v33 = vsub.f32 %v5440_v15, %v5460_v50  ;;  %v1570_v7 = vand.u32 4294901760, %v1569_v57  ;;  %v7049_v52 = vand.u32 4294901760, %v5314_v60  ;;  %v24_v50 = vld [vmem:[%s7025_s2 + $0x38] sm:$0xff] }
  0x21   :  { %7272 = vst [vmem:[#allocation12_spill] sm:$0xff] %v5469_v20  ;;  %v219_v3 = vand.u32 4294901760, %v218_v28  ;;  %v4337_v43 = vpack.c.bf16 %v376_v30, %v364_v53  ;;  %v1582_v29 = vand.u32 4294901760, %v1581_v14  ;;  %v240_v42 = vsub.f32 %v5450_v40, %v5469_v20  ;;  %v25_v14 = vld [vmem:[%s7025_s2 + $0x40] sm:$0xff] }
  0x22   :  { %209 = vmatmul.mubr.f32.gmra.mrb[4].mxu0 %v208_v11  ;;  %1415 = vmatmul.mubr.f32.gmra.mrb[4].mxu1 %v208_v11  ;;  %v369_v2 = vsub.f32 %v5314_v60, %v7049_v52  ;;  %v26_v11 = vld [vmem:[%s7025_s2 + $0x48] sm:$0xff]  ;;  %v7273_v30 = vmov 0.0   ;;  %v230_v53 = vand.u32 4294901760, %v229_v33  ;;  %v7060_v52 = vand.u32 4294901760, %v5358_v18 }
  0x23   :  { %214 = vmatprep.mubr.f32.mxu0 %v7273_v30  ;;  %1420 = vmatprep.mubr.f32.mxu1 %v7273_v30  ;;  %v4385_v28 = vpack.c.bf16 %v1582_v29, %v1570_v7  ;;  %v71_v36 = vsel %vm51_vm1, %v23_v6, 0  ;;  %v7274_v20 = vand.u32 4294901760, %v5319_v62  ;;  %v1575_v40 = vsub.f32 %v5340_v8, %v7275_v32 }
  0x24   :  { %4338 = vmatprep.subr.bf16.mxu0 %v4337_v43  ;;  %v370_v57 = vand.u32 4294901760, %v369_v2  ;;  %v5506_v15 = vand.u32 4294901760, %v71_v36  ;;  %v1587_v7 = vsub.f32 %v5358_v18, %v7060_v52  ;;  %v74_v29 = vsel %vm51_vm1, %v24_v50, 0 }
  0x25   :  { %v381_v51 = vsub.f32 %v5319_v62, %v7274_v20  ;;  %4386 = vmatprep.subr.bf16.mxu1 %v4385_v28  ;;  %v77_v6 = vsel %vm51_vm1, %v25_v14, 0  ;;  %v80_v43 = vsel %vm51_vm1, %v26_v11, 0  ;;  %v1576_v33 = vand.u32 4294901760, %v1575_v40  ;;  %v27_v28 = vld [vmem:[%s7025_s2 + $0x50] sm:$0xff] }
  0x26   :  { %220 = vmatmul.mubr.f32.gmra.mrb[6].mxu0 %v219_v3  ;;  %1426 = vmatmul.mubr.f32.gmra.mrb[6].mxu1 %v219_v3  ;;  %v5515_v2 = vsub.f32 %v71_v36, %v5506_v15  ;;  %v5517_v32 = vand.u32 4294901760, %v74_v29  ;;  %v5524_v50 = vsub.f32 %v5305_v56, %v5327_v1  ;;  %v5528_v14 = vsub.f32 %v5334_v4, %v5344_v9 }
  0x27   :  { %v382_v20 = vand.u32 4294901760, %v381_v51  ;;  %225 = vmatprep.mubr.f32.mxu0 %v7273_v30  ;;  %1431 = vmatprep.mubr.f32.mxu1 %v7273_v30  ;;  %v1588_v3 = vand.u32 4294901760, %v1587_v7  ;;  %v5532_v51 = vand.u32 4294901760, %v77_v6  ;;  %v5540_v56 = vand.u32 4294901760, %v80_v43 }
  0x28   :  { %7276 = vst [vmem:[#allocation13_spill] sm:$0xff] %v5515_v2  ;;  %v5535_v36 = vand.u32 4294901760, %v5515_v2  ;;  %v5538_v11 = vsub.f32 %v74_v29, %v5517_v32  ;;  %v83_v12 = vsel %vm51_vm1, %v27_v28, 0  ;;  %v5548_v7 = vsub.f32 %v5299_v54, %v5317_v61 }
  0x29   :  { %v4339_v40 = vpack.c.bf16 %v382_v20, %v370_v57  ;;  %v4387_v52 = vpack.c.bf16 %v1588_v3, %v1576_v33  ;;  %v5543_v4 = vsub.f32 %v77_v6, %v5532_v51  ;;  %v241_v57 = vand.u32 4294901760, %v240_v42 }
  0x2a   :  { %7277 = vst [vmem:[#allocation14_spill] sm:$0xff] %v5535_v36  ;;  %7278 = vst [vmem:[#allocation15_spill] sm:$0xff] %v5538_v11  ;;  %231 = vmatmul.mubr.f32.gmra.mrb[8].mxu0 %v230_v53  ;;  %1437 = vmatmul.mubr.f32.gmra.mrb[8].mxu1 %v230_v53  ;;  %v251_v20 = vsub.f32 %v5515_v2, %v5535_v36  ;;  %v5553_v29 = vand.u32 4294901760, %v5538_v11  ;;  %v5557_v33 = vsub.f32 %v5302_v55, %v5324_v0 }
  0x2b   :  { %236 = vmatprep.mubr.f32.mxu0 %v7273_v30  ;;  %1442 = vmatprep.mubr.f32.mxu1 %v7273_v30  ;;  %v7067_v54 = vand.u32 4294901760, %v5548_v7  ;;  %v7068_v6 = vand.u32 4294901760, %v5524_v50  ;;  %v5563_v42 = vand.u32 4294901760, %v83_v12  ;;  %v5567_v28 = vand.u32 4294901760, %v5543_v4 }
  0x2c   :  { %7279 = vst [vmem:[#allocation16_spill] sm:$0xff] %v5553_v29  ;;  %4340 = vmatpush1.bf16.msra.mxu0 %v4339_v40  ;;  %4388 = vmatpush1.bf16.msra.mxu1 %v4387_v52  ;;  %v5570_v55 = vsub.f32 %v80_v43, %v5540_v56  ;;  %v28_v52 = vld [vmem:[%s7025_s2 + $0x58] sm:$0xff]  ;;  %v252_v40 = vand.u32 4294901760, %v251_v20  ;;  %v262_v53 = vsub.f32 %v5538_v11, %v5553_v29  ;;  %v7281_v43 = vand.u32 4294901760, %v5557_v33  ;;  %v29_v29 = vld [vmem:[%s7025_s2 + $0x60] sm:$0xff] }
  0x2d   :  { %7280 = vst [vmem:[#allocation17_spill] sm:$0xff] %v5567_v28  ;;  %v387_v3 = vsub.f32 %v5548_v7, %v7067_v54  ;;  %v393_v36 = vsub.f32 %v5524_v50, %v7068_v6  ;;  %v7077_v54 = vand.u32 4294901760, %v5528_v14  ;;  %v86_v20 = vsel %vm51_vm1, %v28_v52, 0 }
  0x2e   :  { %242 = vmatmul.mubr.f32.gmra.mrb[10].mxu0 %v241_v57  ;;  %1448 = vmatmul.mubr.f32.gmra.mrb[10].mxu1 %v241_v57  ;;  %v1593_v2 = vsub.f32 %v5557_v33, %v7281_v43  ;;  %v5597_v43 = vand.u32 4294901760, %v5570_v55  ;;  %v5600_v11 = vsub.f32 %v83_v12, %v5563_v42  ;;  %v89_v12 = vsel %vm51_vm1, %v29_v29, 0 }
  0x2f   :  { %247 = vmatprep.mubr.f32.mxu0 %v7273_v30  ;;  %1453 = vmatprep.mubr.f32.mxu1 %v7273_v30  ;;  %v388_v6 = vand.u32 4294901760, %v387_v3  ;;  %v394_v1 = vand.u32 4294901760, %v393_v36  ;;  %v1599_v57 = vsub.f32 %v5528_v14, %v7077_v54  ;;  %v263_v36 = vand.u32 4294901760, %v262_v53  ;;  %v30_v53 = vld [vmem:[%s7025_s2 + $0x68] sm:$0xf] }
  0x30   :  { %v1594_v9 = vand.u32 4294901760, %v1593_v2  ;;  %7282 = vst [vmem:[#allocation18_spill] sm:$0xff] %v5597_v43  ;;  %7283 = vst [vmem:[#allocation19_spill] sm:$0xff] %v5600_v11  ;;  %v4341_v2 = vpack.c.bf16 %v5238_v21, %v5227_v17  ;;  %v273_v3 = vsub.f32 %v5543_v4, %v5567_v28  ;;  %v5606_v54 = vand.u32 4294901760, %v86_v20 }
  0x31   :  { %389 = vmatprep.subr.mxu0 %v388_v6  ;;  %v1600_v52 = vand.u32 4294901760, %v1599_v57  ;;  %v5619_v57 = vand.u32 4294901760, %v5600_v11  ;;  %v284_v6 = vsub.f32 %v5570_v55, %v5597_v43  ;;  %v92_v28 = vsel %vm51_vm1, %v30_v53, 0 }
  0x32   :  { %253 = vmatmul.mubr.f32.gmra.mrb[12].mxu0 %v252_v40  ;;  %1459 = vmatmul.mubr.f32.gmra.mrb[12].mxu1 %v252_v40  ;;  %v4389_v40 = vpack.c.bf16 %v5250_v26, %v5242_v23  ;;  %v274_v29 = vand.u32 4294901760, %v273_v3  ;;  %v7291_v43 = vand.u32 4294901760, %v5242_v23  ;;  %v7296_v23 = vand.u32 4294901760, %v5280_v44 }
  0x33   :  { %258 = vmatprep.mubr.f32.mxu0 %v7273_v30  ;;  %1464 = vmatprep.mubr.f32.mxu1 %v7273_v30  ;;  %7284 = vst [vmem:[#allocation20_spill] sm:$0xff] %v5619_v57 }
  0x34   :  { %1595 = vmatprep.subr.mxu1 %v1594_v9  ;;  %395 = vmatpush1.msra.mxu0 %v394_v1  ;;  %v5624_v1 = vsub.f32 %v86_v20, %v5606_v54  ;;  %v5626_v9 = vand.u32 4294901760, %v89_v12 }
  0x35   :  { %1601 = vmatpush1.msra.mxu1 %v1600_v52  ;;  %4342 = vmatprep.subr.bf16.mxu0 %v4341_v2  ;;  %v295_v2 = vsub.f32 %v5600_v11, %v5619_v57  ;;  %v5639_v52 = vand.u32 4294901760, %v92_v28 }
  0x36   :  { %264 = vmatmul.mubr.f32.gmra.mrb[14].mxu0 %v263_v36  ;;  %1470 = vmatmul.mubr.f32.gmra.mrb[14].mxu1 %v263_v36  ;;  %7285 = vst [vmem:[#allocation21_spill] sm:$0xff] %v5624_v1  ;;  %v285_v36 = vand.u32 4294901760, %v284_v6  ;;  %v5634_v3 = vand.u32 4294901760, %v5624_v1  ;;  %v5637_v20 = vsub.f32 %v89_v12, %v5626_v9 }
  0x37   :  { %269 = vmatprep.mubr.f32.mxu0 %v7273_v30  ;;  %1475 = vmatprep.mubr.f32.mxu1 %v7273_v30  ;;  %v296_v53 = vand.u32 4294901760, %v295_v2 }
  0x38   :  { %4390 = vmatprep.subr.bf16.mxu1 %v4389_v40  ;;  %7286 = vst [vmem:[#allocation22_spill] sm:$0xff] %v5634_v3  ;;  %7287 = vst [vmem:[#allocation23_spill] sm:$0xff] %v5637_v20  ;;  %v306_v40 = vsub.f32 %v5624_v1, %v5634_v3  ;;  %v5646_v6 = vand.u32 4294901760, %v5637_v20  ;;  %v7290_v3 = vand.u32 4294901760, %v5238_v21  ;;  %v7293_v1 = vand.u32 4294901760, %v5257_v31 }
  0x39   :  { %v7295_v21 = vand.u32 4294901760, %v5269_v39 }
  0x3a   :  { %275 = vmatmul.mubr.f32.gmra.mrb[16].mxu0 %v274_v29  ;;  %1481 = vmatmul.mubr.f32.gmra.mrb[16].mxu1 %v274_v29  ;;  %7288 = vst [vmem:[#allocation24_spill] sm:$0xff] %v5646_v6  ;;  %v5649_v29 = vsub.f32 %v92_v28, %v5639_v52  ;;  %v307_v12 = vand.u32 4294901760, %v306_v40  ;;  %v7289_v28 = vand.u32 4294901760, %v5227_v17  ;;  %v7294_v17 = vand.u32 4294901760, %v5265_v37 }
  0x3b   :  { %280 = vmatprep.mubr.f32.mxu0 %v7273_v30  ;;  %1486 = vmatprep.mubr.f32.mxu1 %v7273_v30 }
  0x3c   :  { %v5656_v2 = vand.u32 4294901760, %v5649_v29  ;;  %v5664_v57 = vpack.c.bf16 %v7290_v3, %v7289_v28  ;;  %v5678_v11 = vpack.c.bf16 %v7294_v17, %v7293_v1  ;;  %v5684_v3 = vpack.c.bf16 %v7296_v23, %v7295_v21 }
  0x3d   :  { %v4345_v1 = vpack.c.bf16 %v5289_v48, %v5284_v46  ;;  %v7302_v17 = vand.u32 4294901760, %v5314_v60  ;;  %v7303_v21 = vand.u32 4294901760, %v5319_v62 }
  0x3e   :  { %286 = vmatmul.mubr.f32.gmra.mrb[18].mxu0 %v285_v36  ;;  %1492 = vmatmul.mubr.f32.gmra.mrb[18].mxu1 %v285_v36  ;;  %v317_v36 = vsub.f32 %v5637_v20, %v5646_v6  ;;  %v328_v20 = vsub.f32 %v5649_v29, %v5656_v2 }
  0x3f   :  { %291 = vmatprep.mubr.f32.mxu0 %v7273_v30  ;;  %1497 = vmatprep.mubr.f32.mxu1 %v7273_v30  ;;  %v5729_v23 = vpack.c.bf16 %v7303_v21, %v7302_v17  ;;  %v2579_v17 = vld [vmem:[%s7027_s1 + $0x20] sm:$0xff] }
  0x40   :  { %v318_v6 = vand.u32 4294901760, %v317_v36  ;;  %v7299_v36 = vand.u32 4294901760, %v5289_v48  ;;  %v7305_v48 = vand.u32 4294901760, %v5358_v18 }
  0x42   :  { %297 = vmatmul.mubr.f32.gmra.mrb[20].mxu0 %v296_v53  ;;  %1503 = vmatmul.mubr.f32.gmra.mrb[20].mxu1 %v296_v53  ;;  %v7292_v53 = vand.u32 4294901760, %v5250_v26  ;;  %v329_v26 = vand.u32 4294901760, %v328_v20  ;;  %v7297_v20 = vpack.c.bf16 %v5265_v37, %v5257_v31  ;;  %v7300_v31 = vand.u32 4294901760, %v5291_v49 }
  0x43   :  { %302 = vmatprep.mubr.f32.mxu0 %v7273_v30  ;;  %1508 = vmatprep.mubr.f32.mxu1 %v7273_v30  ;;  %v7301_v37 = vand.u32 4294901760, %v5310_v58 }
  0x44   :  { %v5670_v40 = vpack.c.bf16 %v7292_v53, %v7291_v43  ;;  %v4391_v43 = vpack.c.bf16 %v5280_v44, %v5269_v39  ;;  %v4347_v39 = vpack.c.bf16 %v5319_v62, %v5314_v60  ;;  %v4395_v44 = vpack.c.bf16 %v5358_v18, %v5340_v8  ;;  %v7308_v60 = vld [vmem:[#allocation6_spill] sm:$0xff]  ;;  %v7309_v62 = vld [vmem:[#allocation8_spill] sm:$0xff]  ;;  %v7311_v18 = vld [vmem:[#allocation13_spill] sm:$0xff] }
  0x45   :  { %v5721_v53 = vpack.c.bf16 %v7301_v37, %v7300_v31 }
  0x46   :  { %308 = vmatmul.mubr.f32.gmra.mrb[22].mxu0 %v307_v12  ;;  %1514 = vmatmul.mubr.f32.gmra.mrb[22].mxu1 %v307_v12  ;;  %v7298_v12 = vand.u32 4294901760, %v5284_v46  ;;  %v7304_v46 = vand.u32 4294901760, %v5340_v8  ;;  %v7310_v8 = vld [vmem:[#allocation10_spill] sm:$0xff] }
  0x47   :  { %313 = vmatprep.mubr.f32.mxu0 %v7273_v30  ;;  %1519 = vmatprep.mubr.f32.mxu1 %v7273_v30 }
  0x48   :  { %v5715_v28 = vpack.c.bf16 %v7299_v36, %v7298_v12  ;;  %v2578_v36 = vld [vmem:[%s7027_s1 + $0x18] sm:$0xff] }
  0x4a   :  { %319 = vmatmul.mubr.f32.gmra.mrb[24].mxu0 %v318_v6  ;;  %1525 = vmatmul.mubr.f32.gmra.mrb[24].mxu1 %v318_v6  ;;  %v4393_v6 = vpack.c.bf16 %v5310_v58, %v5291_v49  ;;  %v7306_v49 = vld [vmem:[#allocation2_spill] sm:$0xff]  ;;  %v7307_v58 = vld [vmem:[#allocation3_spill] sm:$0xff] }
  0x4b   :  { %324 = vmatprep.mubr.f32.mxu0 %v7273_v30  ;;  %1530 = vmatprep.mubr.f32.mxu1 %v7273_v30 }
  0x4e   :  { %330 = vmatmul.mubr.f32.gmra.mrb[26].mxu0 %v329_v26  ;;  %1536 = vmatmul.mubr.f32.gmra.mrb[26].mxu1 %v329_v26  ;;  %v5735_v26 = vpack.c.bf16 %v7305_v48, %v7304_v46 }
  0x4f   :  { %450 = vmatprep.mubr.f32.mxu0 %v7273_v30  ;;  %1656 = vmatprep.mubr.f32.mxu1 %v7273_v30 }
  0x52   :  { %452 = vmatmul.mubr.f32.vlgmr.msra.gmra.mrb[0].mxu0 %v5346_v10  ;;  %1658 = vmatmul.mubr.f32.vlgmr.msra.gmra.mrb[0].mxu1 %v5346_v10 }
  0x53   :  { %457 = vmatprep.mubr.f32.mxu0 %v7273_v30  ;;  %1663 = vmatprep.mubr.f32.mxu1 %v7273_v30 }
  0x54   :  { %4344 = vmatpush1.bf16.msra.mxu0 %v7297_v20  ;;  %4392 = vmatpush1.bf16.msra.mxu1 %v4391_v43  ;;  %v7322_v43 = vand.u32 4294901760, %v5528_v14  ;;  %v7331_v20 = vld [vmem:[#allocation22_spill] sm:$0xff] }
  0x55   :  { %4346 = vmatprep.subr.bf16.mxu0 %v4345_v1  ;;  %4394 = vmatprep.subr.bf16.mxu1 %v4393_v6  ;;  %v7329_v1 = vld [vmem:[#allocation18_spill] sm:$0xff]  ;;  %v7330_v6 = vld [vmem:[#allocation20_spill] sm:$0xff] }
  0x56   :  { %459 = vmatmul.mubr.f32.gmra.mrb[2].mxu0 %v5366_v25  ;;  %1665 = vmatmul.mubr.f32.gmra.mrb[2].mxu1 %v5366_v25 }
  0x57   :  { %464 = vmatprep.mubr.f32.mxu0 %v7273_v30  ;;  %1670 = vmatprep.mubr.f32.mxu1 %v7273_v30 }
  0x58   :  { %4348 = vmatpush1.bf16.msra.mxu0 %v4347_v39  ;;  %4396 = vmatpush1.bf16.msra.mxu1 %v4395_v44  ;;  %v7332_v39 = vld [vmem:[#allocation24_spill] sm:$0xff] }
  0x59   :  { %575 = vmatprep.subr.mxu0 %v5548_v7  ;;  %1781 = vmatprep.subr.mxu1 %v5557_v33 }
  0x5a   :  { %466 = vmatmul.mubr.f32.gmra.mrb[4].mxu0 %v5415_v41  ;;  %1672 = vmatmul.mubr.f32.gmra.mrb[4].mxu1 %v5415_v41 }
  0x5b   :  { %471 = vmatprep.mubr.f32.mxu0 %v7273_v30  ;;  %1677 = vmatprep.mubr.f32.mxu1 %v7273_v30 }
  0x5c   :  { %578 = vmatpush1.msra.mxu0 %v5524_v50  ;;  %1784 = vmatpush1.msra.mxu1 %v5528_v14  ;;  %v7328_v14 = vld [vmem:[#allocation17_spill] sm:$0xff] }
  0x5d   :  { %4350 = vmatprep.subr.bf16.mxu0 %v5225_v16  ;;  %4398 = vmatprep.subr.bf16.mxu1 %v5240_v22 }
  0x5e   :  { %473 = vmatmul.mubr.f32.gmra.mrb[6].mxu0 %v5419_v35  ;;  %1679 = vmatmul.mubr.f32.gmra.mrb[6].mxu1 %v5419_v35 }
  0x5f   :  { %478 = vmatprep.mubr.f32.mxu0 %v7273_v30  ;;  %1684 = vmatprep.mubr.f32.mxu1 %v7273_v30 }
  0x62   :  { %480 = vmatmul.mubr.f32.gmra.mrb[8].mxu0 %v5426_v13  ;;  %1686 = vmatmul.mubr.f32.gmra.mrb[8].mxu1 %v5426_v13 }
  0x63   :  { %485 = vmatprep.mubr.f32.mxu0 %v7273_v30  ;;  %1691 = vmatprep.mubr.f32.mxu1 %v7273_v30 }
  0x66   :  { %487 = vmatmul.mubr.f32.gmra.mrb[10].mxu0 %v5433_v27  ;;  %1693 = vmatmul.mubr.f32.gmra.mrb[10].mxu1 %v5433_v27 }
  0x67   :  { %492 = vmatprep.mubr.f32.mxu0 %v7273_v30  ;;  %1698 = vmatprep.mubr.f32.mxu1 %v7273_v30 }
  0x6a   :  { %494 = vmatmul.mubr.f32.gmra.mrb[12].mxu0 %v5506_v15  ;;  %1700 = vmatmul.mubr.f32.gmra.mrb[12].mxu1 %v5506_v15 }
  0x6b   :  { %499 = vmatprep.mubr.f32.mxu0 %v7273_v30  ;;  %1705 = vmatprep.mubr.f32.mxu1 %v7273_v30 }
  0x6e   :  { %501 = vmatmul.mubr.f32.gmra.mrb[14].mxu0 %v5517_v32  ;;  %1707 = vmatmul.mubr.f32.gmra.mrb[14].mxu1 %v5517_v32 }
  0x6f   :  { %506 = vmatprep.mubr.f32.mxu0 %v7273_v30  ;;  %1712 = vmatprep.mubr.f32.mxu1 %v7273_v30 }
  0x72   :  { %508 = vmatmul.mubr.f32.gmra.mrb[16].mxu0 %v5532_v51  ;;  %1714 = vmatmul.mubr.f32.gmra.mrb[16].mxu1 %v5532_v51 }
  0x73   :  { %513 = vmatprep.mubr.f32.mxu0 %v7273_v30  ;;  %1719 = vmatprep.mubr.f32.mxu1 %v7273_v30 }
  0x76   :  { %515 = vmatmul.mubr.f32.gmra.mrb[18].mxu0 %v5540_v56  ;;  %1721 = vmatmul.mubr.f32.gmra.mrb[18].mxu1 %v5540_v56 }
  0x77   :  { %520 = vmatprep.mubr.f32.mxu0 %v7273_v30  ;;  %1726 = vmatprep.mubr.f32.mxu1 %v7273_v30 }
  0x7a   :  { %522 = vmatmul.mubr.f32.gmra.mrb[20].mxu0 %v5563_v42  ;;  %1728 = vmatmul.mubr.f32.gmra.mrb[20].mxu1 %v5563_v42 }
  0x7b   :  { %527 = vmatprep.mubr.f32.mxu0 %v7273_v30  ;;  %1733 = vmatprep.mubr.f32.mxu1 %v7273_v30 }
  0x7e   :  { %529 = vmatmul.mubr.f32.gmra.mrb[22].mxu0 %v5606_v54  ;;  %1735 = vmatmul.mubr.f32.gmra.mrb[22].mxu1 %v5606_v54 }
  0x7f   :  { %534 = vmatprep.mubr.f32.mxu0 %v7273_v30  ;;  %1740 = vmatprep.mubr.f32.mxu1 %v7273_v30 }
  0x82   :  { %536 = vmatmul.mubr.f32.gmra.mrb[24].mxu0 %v5626_v9  ;;  %1742 = vmatmul.mubr.f32.gmra.mrb[24].mxu1 %v5626_v9 }
  0x83   :  { %541 = vmatprep.mubr.f32.mxu0 %v7273_v30  ;;  %1747 = vmatprep.mubr.f32.mxu1 %v7273_v30 }
  0x86   :  { %543 = vmatmul.mubr.f32.gmra.mrb[26].mxu0 %v5639_v52  ;;  %1749 = vmatmul.mubr.f32.gmra.mrb[26].mxu1 %v5639_v52 }
  0x87   :  { %633 = vmatprep.mubr.f32.mxu0 %v7273_v30  ;;  %1839 = vmatprep.mubr.f32.mxu1 %v7273_v30 }
  0x8a   :  { %636 = vmatmul.mubr.f32.vlgmr.msra.gmra.mrb[0].mxu0 %v5361_v19  ;;  %1842 = vmatmul.mubr.f32.vlgmr.msra.gmra.mrb[0].mxu1 %v5361_v19  ;;  %v7312_v19 = vld [vmem:[#allocation15_spill] sm:$0xff] }
  0x8b   :  { %641 = vmatprep.mubr.f32.mxu0 %v7273_v30  ;;  %1847 = vmatprep.mubr.f32.mxu1 %v7273_v30 }
  0x8c   :  { %4352 = vmatpush1.bf16.msra.mxu0 %v5244_v24  ;;  %4400 = vmatpush1.bf16.msra.mxu1 %v5267_v38 }
  0x8d   :  { %4354 = vmatprep.subr.bf16.mxu0 %v5282_v45  ;;  %4402 = vmatprep.subr.bf16.mxu1 %v5286_v47 }
  0x8e   :  { %644 = vmatmul.mubr.f32.gmra.mrb[2].mxu0 %v5378_v34  ;;  %1850 = vmatmul.mubr.f32.gmra.mrb[2].mxu1 %v5378_v34  ;;  %v7313_v34 = vld [vmem:[#allocation19_spill] sm:$0xff] }
  0x8f   :  { %649 = vmatprep.mubr.f32.mxu0 %v7273_v30  ;;  %1855 = vmatprep.mubr.f32.mxu1 %v7273_v30 }
  0x90   :  { %4356 = vmatpush1.bf16.msra.mxu0 %v5312_v59  ;;  %4404 = vmatpush1.bf16.msra.mxu1 %v5321_v63 }
  0x91   :  { %763 = vmatprep.subr.mxu0 %v5317_v61  ;;  %1969 = vmatprep.subr.mxu1 %v5324_v0 }
  0x92   :  { %652 = vmatmul.mubr.f32.gmra.mrb[4].mxu0 %v5424_v5  ;;  %1858 = vmatmul.mubr.f32.gmra.mrb[4].mxu1 %v5424_v5  ;;  %v7314_v5 = vld [vmem:[#allocation21_spill] sm:$0xff] }
  0x93   :  { %657 = vmatprep.mubr.f32.mxu0 %v7273_v30  ;;  %1863 = vmatprep.mubr.f32.mxu1 %v7273_v30 }
  0x94   :  { %765 = vmatpush1.msra.mxu0 %v7306_v49  ;;  %1971 = vmatpush1.msra.mxu1 %v7307_v58 }
  0x95   :  { %4358 = vmatprep.subr.bf16.mxu0 %v5664_v57  ;;  %4406 = vmatprep.subr.bf16.mxu1 %v5670_v40  ;;  %v7317_v57 = vld [vmem:[#allocation5_spill] sm:$0xff]  ;;  %v7320_v40 = vld [vmem:[#allocation7_spill] sm:$0xff] }
  0x96   :  { %660 = vmatmul.mubr.f32.gmra.mrb[6].mxu0 %v7308_v60  ;;  %1866 = vmatmul.mubr.f32.gmra.mrb[6].mxu1 %v7308_v60 }
  0x97   :  { %665 = vmatprep.mubr.f32.mxu0 %v7273_v30  ;;  %1871 = vmatprep.mubr.f32.mxu1 %v7273_v30 }
  0x9a   :  { %668 = vmatmul.mubr.f32.gmra.mrb[8].mxu0 %v7309_v62  ;;  %1874 = vmatmul.mubr.f32.gmra.mrb[8].mxu1 %v7309_v62 }
  0x9b   :  { %673 = vmatprep.mubr.f32.mxu0 %v7273_v30  ;;  %1879 = vmatprep.mubr.f32.mxu1 %v7273_v30 }
  0x9e   :  { %676 = vmatmul.mubr.f32.gmra.mrb[10].mxu0 %v7310_v8  ;;  %1882 = vmatmul.mubr.f32.gmra.mrb[10].mxu1 %v7310_v8 }
  0x9f   :  { %681 = vmatprep.mubr.f32.mxu0 %v7273_v30  ;;  %1887 = vmatprep.mubr.f32.mxu1 %v7273_v30 }
  0xa2   :  { %684 = vmatmul.mubr.f32.gmra.mrb[12].mxu0 %v7311_v18  ;;  %1890 = vmatmul.mubr.f32.gmra.mrb[12].mxu1 %v7311_v18 }
  0xa3   :  { %689 = vmatprep.mubr.f32.mxu0 %v7273_v30  ;;  %1895 = vmatprep.mubr.f32.mxu1 %v7273_v30 }
  0xa6   :  { %692 = vmatmul.mubr.f32.gmra.mrb[14].mxu0 %v7312_v19  ;;  %1898 = vmatmul.mubr.f32.gmra.mrb[14].mxu1 %v7312_v19 }
  0xa7   :  { %697 = vmatprep.mubr.f32.mxu0 %v7273_v30  ;;  %1903 = vmatprep.mubr.f32.mxu1 %v7273_v30 }
  0xaa   :  { %700 = vmatmul.mubr.f32.gmra.mrb[16].mxu0 %v5543_v4  ;;  %1906 = vmatmul.mubr.f32.gmra.mrb[16].mxu1 %v5543_v4  ;;  %v7315_v4 = vld [vmem:[#allocation23_spill] sm:$0xff] }
  0xab   :  { %705 = vmatprep.mubr.f32.mxu0 %v7273_v30  ;;  %1911 = vmatprep.mubr.f32.mxu1 %v7273_v30 }
  0xae   :  { %708 = vmatmul.mubr.f32.gmra.mrb[18].mxu0 %v5570_v55  ;;  %1914 = vmatmul.mubr.f32.gmra.mrb[18].mxu1 %v5570_v55  ;;  %v7316_v55 = vld [vmem:[#allocation4_spill] sm:$0xff] }
  0xaf   :  { %713 = vmatprep.mubr.f32.mxu0 %v7273_v30  ;;  %1919 = vmatprep.mubr.f32.mxu1 %v7273_v30 }
  0xb2   :  { %716 = vmatmul.mubr.f32.gmra.mrb[20].mxu0 %v7313_v34  ;;  %1922 = vmatmul.mubr.f32.gmra.mrb[20].mxu1 %v7313_v34 }
  0xb3   :  { %721 = vmatprep.mubr.f32.mxu0 %v7273_v30  ;;  %1927 = vmatprep.mubr.f32.mxu1 %v7273_v30 }
  0xb6   :  { %724 = vmatmul.mubr.f32.gmra.mrb[22].mxu0 %v7314_v5  ;;  %1930 = vmatmul.mubr.f32.gmra.mrb[22].mxu1 %v7314_v5 }
  0xb7   :  { %729 = vmatprep.mubr.f32.mxu0 %v7273_v30  ;;  %1935 = vmatprep.mubr.f32.mxu1 %v7273_v30 }
  0xba   :  { %732 = vmatmul.mubr.f32.gmra.mrb[24].mxu0 %v7315_v4  ;;  %1938 = vmatmul.mubr.f32.gmra.mrb[24].mxu1 %v7315_v4  ;;  %v2582_v4 = vld [vmem:[%s7027_s1 + $0x38] sm:$0xff] }
  0xbb   :  { %737 = vmatprep.mubr.f32.mxu0 %v7273_v30  ;;  %1943 = vmatprep.mubr.f32.mxu1 %v7273_v30 }
  0xbe   :  { %740 = vmatmul.mubr.f32.gmra.mrb[26].mxu0 %v5649_v29  ;;  %1946 = vmatmul.mubr.f32.gmra.mrb[26].mxu1 %v5649_v29  ;;  %v7319_v29 = vand.u32 4294901760, %v5557_v33  ;;  %v7324_v33 = vld [vmem:[#allocation11_spill] sm:$0xff] }
  0xbf   :  { %820 = vmatprep.mubr.f32.mxu0 %v7273_v30  ;;  %2026 = vmatprep.mubr.f32.mxu1 %v7273_v30 }
  0xc2   :  { %824 = vmatmul.mubr.f32.vlgmr.msra.gmra.mrb[0].mxu0 %v7316_v55  ;;  %2030 = vmatmul.mubr.f32.vlgmr.msra.gmra.mrb[0].mxu1 %v7316_v55 }
  0xc3   :  { %829 = vmatprep.mubr.f32.mxu0 %v7273_v30  ;;  %2035 = vmatprep.mubr.f32.mxu1 %v7273_v30 }
  0xc4   :  { %4360 = vmatpush1.bf16.msra.mxu0 %v5678_v11  ;;  %4408 = vmatpush1.bf16.msra.mxu1 %v5684_v3  ;;  %v7318_v11 = vand.u32 4294901760, %v5548_v7  ;;  %v7321_v3 = vand.u32 4294901760, %v5524_v50  ;;  %v7323_v7 = vld [vmem:[#allocation9_spill] sm:$0xff]  ;;  %v7325_v50 = vld [vmem:[#allocation12_spill] sm:$0xff] }
  0xc5   :  { %4362 = vmatprep.subr.bf16.mxu0 %v5715_v28  ;;  %4410 = vmatprep.subr.bf16.mxu1 %v5721_v53 }
  0xc6   :  { %833 = vmatmul.mubr.f32.gmra.mrb[2].mxu0 %v7317_v57  ;;  %2039 = vmatmul.mubr.f32.gmra.mrb[2].mxu1 %v7317_v57 }
  0xc7   :  { %838 = vmatprep.mubr.f32.mxu0 %v7273_v30  ;;  %2044 = vmatprep.mubr.f32.mxu1 %v7273_v30 }
  0xc8   :  { %4364 = vmatpush1.bf16.msra.mxu0 %v5729_v23  ;;  %4412 = vmatpush1.bf16.msra.mxu1 %v5735_v26  ;;  %v2581_v26 = vld [vmem:[%s7027_s1 + $0x30] sm:$0xff] }
  0xc9   :  { %982 = vmatprep.subr.mxu0 %v7318_v11  ;;  %2188 = vmatprep.subr.mxu1 %v7319_v29 }
  0xca   :  { %842 = vmatmul.mubr.f32.gmra.mrb[4].mxu0 %v7320_v40  ;;  %2048 = vmatmul.mubr.f32.gmra.mrb[4].mxu1 %v7320_v40 }
  0xcb   :  { %847 = vmatprep.mubr.f32.mxu0 %v7273_v30  ;;  %2053 = vmatprep.mubr.f32.mxu1 %v7273_v30 }
  0xcc   :  { %986 = vmatpush1.msra.mxu0 %v7321_v3  ;;  %2192 = vmatpush1.msra.mxu1 %v7322_v43 }
  0xcd   :  { %4366 = vmatprep.subr.bf16.mxu0 %v5225_v16  ;;  %4414 = vmatprep.subr.bf16.mxu1 %v5240_v22  ;;  %v7326_v16 = vld [vmem:[#allocation14_spill] sm:$0xff]  ;;  %v7327_v22 = vld [vmem:[#allocation16_spill] sm:$0xff] }
  0xce   :  { %851 = vmatmul.mubr.f32.gmra.mrb[6].mxu0 %v7323_v7  ;;  %2057 = vmatmul.mubr.f32.gmra.mrb[6].mxu1 %v7323_v7 }
  0xcf   :  { %856 = vmatprep.mubr.f32.mxu0 %v7273_v30  ;;  %2062 = vmatprep.mubr.f32.mxu1 %v7273_v30 }
  0xd2   :  { %860 = vmatmul.mubr.f32.gmra.mrb[8].mxu0 %v7324_v33  ;;  %2066 = vmatmul.mubr.f32.gmra.mrb[8].mxu1 %v7324_v33 }
  0xd3   :  { %865 = vmatprep.mubr.f32.mxu0 %v7273_v30  ;;  %2071 = vmatprep.mubr.f32.mxu1 %v7273_v30 }
  0xd6   :  { %869 = vmatmul.mubr.f32.gmra.mrb[10].mxu0 %v7325_v50  ;;  %2075 = vmatmul.mubr.f32.gmra.mrb[10].mxu1 %v7325_v50 }
  0xd7   :  { %874 = vmatprep.mubr.f32.mxu0 %v7273_v30  ;;  %2080 = vmatprep.mubr.f32.mxu1 %v7273_v30 }
  0xda   :  { %878 = vmatmul.mubr.f32.gmra.mrb[12].mxu0 %v7326_v16  ;;  %2084 = vmatmul.mubr.f32.gmra.mrb[12].mxu1 %v7326_v16 }
  0xdb   :  { %883 = vmatprep.mubr.f32.mxu0 %v7273_v30  ;;  %2089 = vmatprep.mubr.f32.mxu1 %v7273_v30 }
  0xde   :  { %887 = vmatmul.mubr.f32.gmra.mrb[14].mxu0 %v7327_v22  ;;  %2093 = vmatmul.mubr.f32.gmra.mrb[14].mxu1 %v7327_v22 }
  0xdf   :  { %892 = vmatprep.mubr.f32.mxu0 %v7273_v30  ;;  %2098 = vmatprep.mubr.f32.mxu1 %v7273_v30 }
  0xe2   :  { %896 = vmatmul.mubr.f32.gmra.mrb[16].mxu0 %v7328_v14  ;;  %2102 = vmatmul.mubr.f32.gmra.mrb[16].mxu1 %v7328_v14 }
  0xe3   :  { %901 = vmatprep.mubr.f32.mxu0 %v7273_v30  ;;  %2107 = vmatprep.mubr.f32.mxu1 %v7273_v30 }
  0xe6   :  { %905 = vmatmul.mubr.f32.gmra.mrb[18].mxu0 %v7329_v1  ;;  %2111 = vmatmul.mubr.f32.gmra.mrb[18].mxu1 %v7329_v1 }
  0xe7   :  { %910 = vmatprep.mubr.f32.mxu0 %v7273_v30  ;;  %2116 = vmatprep.mubr.f32.mxu1 %v7273_v30 }
  0xea   :  { %914 = vmatmul.mubr.f32.gmra.mrb[20].mxu0 %v7330_v6  ;;  %2120 = vmatmul.mubr.f32.gmra.mrb[20].mxu1 %v7330_v6 }
  0xeb   :  { %919 = vmatprep.mubr.f32.mxu0 %v7273_v30  ;;  %2125 = vmatprep.mubr.f32.mxu1 %v7273_v30 }
  0xee   :  { %923 = vmatmul.mubr.f32.gmra.mrb[22].mxu0 %v7331_v20  ;;  %2129 = vmatmul.mubr.f32.gmra.mrb[22].mxu1 %v7331_v20 }
  0xef   :  { %928 = vmatprep.mubr.f32.mxu0 %v7273_v30  ;;  %2134 = vmatprep.mubr.f32.mxu1 %v7273_v30 }
  0xf2   :  { %932 = vmatmul.mubr.f32.gmra.mrb[24].mxu0 %v7332_v39  ;;  %2138 = vmatmul.mubr.f32.gmra.mrb[24].mxu1 %v7332_v39  ;;  %v2584_v39 = vld [vmem:[%s7027_s1 + $0x48] sm:$0xff] }
  0xf3   :  { %937 = vmatprep.mubr.f32.mxu0 %v7273_v30  ;;  %2143 = vmatprep.mubr.f32.mxu1 %v7273_v30 }
  0xf6   :  { %941 = vmatmul.mubr.f32.gmra.mrb[26].mxu0 %v5656_v2  ;;  %2147 = vmatmul.mubr.f32.gmra.mrb[26].mxu1 %v5656_v2 }
  0xf7   :  { %1041 = vmatprep.mubr.f32.mxu0 %v7273_v30  ;;  %2247 = vmatprep.mubr.f32.mxu1 %v7273_v30 }
  0xfa   :  { %1043 = vmatmul.mubr.f32.vlgmr.msra.gmra.mrb[0].mxu0 %v5346_v10  ;;  %2249 = vmatmul.mubr.f32.vlgmr.msra.gmra.mrb[0].mxu1 %v5346_v10 }
  0xfb   :  { %1048 = vmatprep.mubr.f32.mxu0 %v7273_v30  ;;  %2254 = vmatprep.mubr.f32.mxu1 %v7273_v30 }
  0xfc   :  { %4368 = vmatpush1.bf16.msra.mxu0 %v5244_v24  ;;  %4416 = vmatpush1.bf16.msra.mxu1 %v5267_v38  ;;  %v2687_v24 = vld [vmem:[%s7026_s3] sm:$0x7] }
  0xfd   :  { %4370 = vmatprep.subr.bf16.mxu0 %v5282_v45  ;;  %4418 = vmatprep.subr.bf16.mxu1 %v5286_v47  ;;  %v2690_v38 = vsel %vm2688_vm2, %v2687_v24, 0 }
  0xfe   :  { %1050 = vmatmul.mubr.f32.gmra.mrb[2].mxu0 %v5366_v25  ;;  %2256 = vmatmul.mubr.f32.gmra.mrb[2].mxu1 %v5366_v25  ;;  %v6056_v45 = vand.u32 4294901760, %v2690_v38 }
  0xff   :  { %1055 = vmatprep.mubr.f32.mxu0 %v7273_v30  ;;  %2261 = vmatprep.mubr.f32.mxu1 %v7273_v30 }
 0x100   :  { %4372 = vmatpush1.bf16.msra.mxu0 %v5312_v59  ;;  %4420 = vmatpush1.bf16.msra.mxu1 %v5321_v63  ;;  %7333 = vst [vmem:[#allocation2_spill] sm:$0xff] %v6056_v45 }
 0x101   :  { %1157 = vmatprep.subr.mxu0 %v5317_v61  ;;  %2363 = vmatprep.subr.mxu1 %v5324_v0  ;;  %v6059_v0 = vsub.f32 %v2690_v38, %v6056_v45 }
 0x102   :  { %1057 = vmatmul.mubr.f32.gmra.mrb[4].mxu0 %v5415_v41  ;;  %2263 = vmatmul.mubr.f32.gmra.mrb[4].mxu1 %v5415_v41 }
 0x103   :  { %1062 = vmatprep.mubr.f32.mxu0 %v7273_v30  ;;  %2268 = vmatprep.mubr.f32.mxu1 %v7273_v30  ;;  %7334 = vst [vmem:[#allocation3_spill] sm:$0xff] %v6059_v0 }
 0x104   :  { %1159 = vmatpush1.msra.mxu0 %v7306_v49  ;;  %2365 = vmatpush1.msra.mxu1 %v7307_v58  ;;  %v2580_v58 = vld [vmem:[%s7027_s1 + $0x28] sm:$0xff] }
 0x106   :  { %1064 = vmatmul.mubr.f32.gmra.mrb[6].mxu0 %v5419_v35  ;;  %2270 = vmatmul.mubr.f32.gmra.mrb[6].mxu1 %v5419_v35 }
 0x107   :  { %1069 = vmatprep.mubr.f32.mxu0 %v7273_v30  ;;  %2275 = vmatprep.mubr.f32.mxu1 %v7273_v30 }
 0x10a   :  { %1071 = vmatmul.mubr.f32.gmra.mrb[8].mxu0 %v5426_v13  ;;  %2277 = vmatmul.mubr.f32.gmra.mrb[8].mxu1 %v5426_v13 }
 0x10b   :  { %1076 = vmatprep.mubr.f32.mxu0 %v7273_v30  ;;  %2282 = vmatprep.mubr.f32.mxu1 %v7273_v30 }
 0x10e   :  { %1078 = vmatmul.mubr.f32.gmra.mrb[10].mxu0 %v5433_v27  ;;  %2284 = vmatmul.mubr.f32.gmra.mrb[10].mxu1 %v5433_v27 }
 0x10f   :  { %1083 = vmatprep.mubr.f32.mxu0 %v7273_v30  ;;  %2289 = vmatprep.mubr.f32.mxu1 %v7273_v30 }
 0x112   :  { %1085 = vmatmul.mubr.f32.gmra.mrb[12].mxu0 %v5506_v15  ;;  %2291 = vmatmul.mubr.f32.gmra.mrb[12].mxu1 %v5506_v15 }
 0x113   :  { %1090 = vmatprep.mubr.f32.mxu0 %v7273_v30  ;;  %2296 = vmatprep.mubr.f32.mxu1 %v7273_v30 }
 0x116   :  { %1092 = vmatmul.mubr.f32.gmra.mrb[14].mxu0 %v5517_v32  ;;  %2298 = vmatmul.mubr.f32.gmra.mrb[14].mxu1 %v5517_v32 }
 0x117   :  { %1097 = vmatprep.mubr.f32.mxu0 %v7273_v30  ;;  %2303 = vmatprep.mubr.f32.mxu1 %v7273_v30 }
 0x11a   :  { %1099 = vmatmul.mubr.f32.gmra.mrb[16].mxu0 %v5532_v51  ;;  %2305 = vmatmul.mubr.f32.gmra.mrb[16].mxu1 %v5532_v51 }
 0x11b   :  { %1104 = vmatprep.mubr.f32.mxu0 %v7273_v30  ;;  %2310 = vmatprep.mubr.f32.mxu1 %v7273_v30 }
 0x11e   :  { %1106 = vmatmul.mubr.f32.gmra.mrb[18].mxu0 %v5540_v56  ;;  %2312 = vmatmul.mubr.f32.gmra.mrb[18].mxu1 %v5540_v56 }
 0x11f   :  { %1111 = vmatprep.mubr.f32.mxu0 %v7273_v30  ;;  %2317 = vmatprep.mubr.f32.mxu1 %v7273_v30 }
 0x122   :  { %1113 = vmatmul.mubr.f32.gmra.mrb[20].mxu0 %v5563_v42  ;;  %2319 = vmatmul.mubr.f32.gmra.mrb[20].mxu1 %v5563_v42 }
 0x123   :  { %1118 = vmatprep.mubr.f32.mxu0 %v7273_v30  ;;  %2324 = vmatprep.mubr.f32.mxu1 %v7273_v30 }
 0x126   :  { %1120 = vmatmul.mubr.f32.gmra.mrb[22].mxu0 %v5606_v54  ;;  %2326 = vmatmul.mubr.f32.gmra.mrb[22].mxu1 %v5606_v54 }
 0x127   :  { %1125 = vmatprep.mubr.f32.mxu0 %v7273_v30  ;;  %2331 = vmatprep.mubr.f32.mxu1 %v7273_v30 }
 0x12a   :  { %1127 = vmatmul.mubr.f32.gmra.mrb[24].mxu0 %v5626_v9  ;;  %2333 = vmatmul.mubr.f32.gmra.mrb[24].mxu1 %v5626_v9 }
 0x12b   :  { %1132 = vmatprep.mubr.f32.mxu0 %v7273_v30  ;;  %2338 = vmatprep.mubr.f32.mxu1 %v7273_v30 }
 0x12e   :  { %1134 = vmatmul.mubr.f32.gmra.mrb[26].mxu0 %v5639_v52  ;;  %2340 = vmatmul.mubr.f32.gmra.mrb[26].mxu1 %v5639_v52 }
 0x12f   :  { %1214 = vmatprep.mubr.f32.mxu0 %v7273_v30  ;;  %2420 = vmatprep.mubr.f32.mxu1 %v7273_v30 }
 0x132   :  { %1216 = vmatmul.mubr.f32.vlgmr.msra.gmra.mrb[0].mxu0 %v5346_v10  ;;  %2422 = vmatmul.mubr.f32.vlgmr.msra.gmra.mrb[0].mxu1 %v5346_v10 }
 0x133   :  { %1221 = vmatprep.mubr.f32.mxu0 %v7273_v30  ;;  %2427 = vmatprep.mubr.f32.mxu1 %v7273_v30 }
 0x136   :  { %1223 = vmatmul.mubr.f32.gmra.mrb[2].mxu0 %v5366_v25  ;;  %2429 = vmatmul.mubr.f32.gmra.mrb[2].mxu1 %v5366_v25 }
 0x137   :  { %1228 = vmatprep.mubr.f32.mxu0 %v7273_v30  ;;  %2434 = vmatprep.mubr.f32.mxu1 %v7273_v30 }
 0x13a   :  { %1230 = vmatmul.mubr.f32.gmra.mrb[4].mxu0 %v5415_v41  ;;  %2436 = vmatmul.mubr.f32.gmra.mrb[4].mxu1 %v5415_v41 }
 0x13b   :  { %1235 = vmatprep.mubr.f32.mxu0 %v7273_v30  ;;  %2441 = vmatprep.mubr.f32.mxu1 %v7273_v30 }
 0x13e   :  { %1237 = vmatmul.mubr.f32.gmra.mrb[6].mxu0 %v5419_v35  ;;  %2443 = vmatmul.mubr.f32.gmra.mrb[6].mxu1 %v5419_v35 }
 0x13f   :  { %1242 = vmatprep.mubr.f32.mxu0 %v7273_v30  ;;  %2448 = vmatprep.mubr.f32.mxu1 %v7273_v30 }
 0x142   :  { %1244 = vmatmul.mubr.f32.gmra.mrb[8].mxu0 %v5426_v13  ;;  %2450 = vmatmul.mubr.f32.gmra.mrb[8].mxu1 %v5426_v13  ;;  %v6062_v13 = vand.u32 4294901760, %v6059_v0 }
 0x143   :  { %1249 = vmatprep.mubr.f32.mxu0 %v7273_v30  ;;  %2455 = vmatprep.mubr.f32.mxu1 %v7273_v30 }
 0x144   :  { %7335 = vst [vmem:[#allocation6_spill] sm:$0xff] %v6062_v13 }
 0x146   :  { %1251 = vmatmul.mubr.f32.gmra.mrb[10].mxu0 %v5433_v27  ;;  %2457 = vmatmul.mubr.f32.gmra.mrb[10].mxu1 %v5433_v27 }
 0x147   :  { %1256 = vmatprep.mubr.f32.mxu0 %v7273_v30  ;;  %2462 = vmatprep.mubr.f32.mxu1 %v7273_v30 }
 0x14a   :  { %1258 = vmatmul.mubr.f32.gmra.mrb[12].mxu0 %v5506_v15  ;;  %2464 = vmatmul.mubr.f32.gmra.mrb[12].mxu1 %v5506_v15 }
 0x14b   :  { %1263 = vmatprep.mubr.f32.mxu0 %v7273_v30  ;;  %2469 = vmatprep.mubr.f32.mxu1 %v7273_v30 }
 0x14e   :  { %1265 = vmatmul.mubr.f32.gmra.mrb[14].mxu0 %v5517_v32  ;;  %2471 = vmatmul.mubr.f32.gmra.mrb[14].mxu1 %v5517_v32 }
 0x14f   :  { %1270 = vmatprep.mubr.f32.mxu0 %v7273_v30  ;;  %2476 = vmatprep.mubr.f32.mxu1 %v7273_v30 }
 0x152   :  { %1272 = vmatmul.mubr.f32.gmra.mrb[16].mxu0 %v5532_v51  ;;  %2478 = vmatmul.mubr.f32.gmra.mrb[16].mxu1 %v5532_v51 }
 0x153   :  { %1277 = vmatprep.mubr.f32.mxu0 %v7273_v30  ;;  %2483 = vmatprep.mubr.f32.mxu1 %v7273_v30 }
 0x156   :  { %1279 = vmatmul.mubr.f32.gmra.mrb[18].mxu0 %v5540_v56  ;;  %2485 = vmatmul.mubr.f32.gmra.mrb[18].mxu1 %v5540_v56  ;;  %v2575_v56 = vld [vmem:[%s7027_s1] sm:$0xff] }
 0x157   :  { %1284 = vmatprep.mubr.f32.mxu0 %v7273_v30  ;;  %2490 = vmatprep.mubr.f32.mxu1 %v7273_v30 }
 0x15a   :  { %1286 = vmatmul.mubr.f32.gmra.mrb[20].mxu0 %v5563_v42  ;;  %2492 = vmatmul.mubr.f32.gmra.mrb[20].mxu1 %v5563_v42 }
 0x15b   :  { %1291 = vmatprep.mubr.f32.mxu0 %v7273_v30  ;;  %2497 = vmatprep.mubr.f32.mxu1 %v7273_v30 }
 0x15e   :  { %1293 = vmatmul.mubr.f32.gmra.mrb[22].mxu0 %v5606_v54  ;;  %2499 = vmatmul.mubr.f32.gmra.mrb[22].mxu1 %v5606_v54  ;;  %v2577_v54 = vld [vmem:[%s7027_s1 + $0x10] sm:$0xff] }
 0x15f   :  { %1298 = vmatprep.mubr.f32.mxu0 %v7273_v30  ;;  %2504 = vmatprep.mubr.f32.mxu1 %v7273_v30 }
 0x162   :  { %1300 = vmatmul.mubr.f32.gmra.mrb[24].mxu0 %v5626_v9  ;;  %2506 = vmatmul.mubr.f32.gmra.mrb[24].mxu1 %v5626_v9  ;;  %v2576_v9 = vld [vmem:[%s7027_s1 + $0x8] sm:$0xff] }
 0x163   :  { %1305 = vmatprep.mubr.f32.mxu0 %v7273_v30  ;;  %2511 = vmatprep.mubr.f32.mxu1 %v7273_v30 }
 0x166   :  { %1307 = vmatmul.mubr.f32.gmra.mrb[26].mxu0 %v5639_v52  ;;  %2513 = vmatmul.mubr.f32.gmra.mrb[26].mxu1 %v5639_v52  ;;  %v2801_v52 = vsub.f32 %v6059_v0, %v6062_v13 }
 0x167   :  { %2797 = vmatprep.mubr.f32.mxu0 %v7273_v30  ;;  %3600 = vmatprep.mubr.f32.mxu1 %v7273_v30 }
 0x168   :  { %v6087_v8 = vand.u32 4294901760, %v2801_v52 }
 0x205   :  { %v1217_v47 = vpop.f32.mrb[0].mxu0  ;;  %v2423_v59 = vpop.f32.mrb[0].mxu1 }
 0x206   :  { %5058 = vtanh.f32 %v1217_v47  ;;  %v1219_v61 = vpop.f32.mrb[1].mxu0  ;;  %v2425_v63 = vpop.f32.mrb[1].mxu1 }
 0x207   :  { %5060 = vtanh.f32 %v2423_v59 }
 0x208   :  { %5062 = vtanh.f32 %v1219_v61 }
 0x209   :  { %5064 = vtanh.f32 %v2425_v63  ;;  %v1224_v10 = vpop.f32.mrb[2].mxu0  ;;  %v2430_v25 = vpop.f32.mrb[2].mxu1 }
 0x20a   :  { %5066 = vtanh.f32 %v1224_v10  ;;  %v1226_v35 = vpop.f32.mrb[3].mxu0  ;;  %v2432_v41 = vpop.f32.mrb[3].mxu1  ;;  %v2586_v10 = vld [vmem:[%s7027_s1 + $0x58] sm:$0xff] }
 0x20b   :  { %5068 = vtanh.f32 %v2430_v25 }
 0x20c   :  { %5070 = vtanh.f32 %v1226_v35 }
 0x20d   :  { %5072 = vtanh.f32 %v2432_v41  ;;  %v1231_v27 = vpop.f32.mrb[4].mxu0  ;;  %v2437_v15 = vpop.f32.mrb[4].mxu1 }
 0x20e   :  { %5074 = vtanh.f32 %v1231_v27  ;;  %v1233_v32 = vpop.f32.mrb[5].mxu0  ;;  %v2439_v51 = vpop.f32.mrb[5].mxu1 }
 0x20f   :  { %5076 = vtanh.f32 %v2437_v15 }
 0x210   :  { %v5059_v42 = vpop.eup %5058  ;;  %5078 = vtanh.f32 %v1233_v32 }
 0x211   :  { %v5061_v2 = vpop.eup %5060  ;;  %5080 = vtanh.f32 %v2439_v51  ;;  %v1238_v44 = vpop.f32.mrb[6].mxu0  ;;  %v2631_v28 = vmul.f32 %v5059_v42, %v2575_v56  ;;  %v2583_v51 = vld [vmem:[%s7027_s1 + $0x40] sm:$0xff] }
 0x212   :  { %v2444_v12 = vpop.f32.mrb[6].mxu1  ;;  %v5063_v31 = vpop.eup %5062  ;;  %5082 = vtanh.f32 %v1238_v44  ;;  %v2633_v21 = vmul.f32 %v5061_v2, %v2577_v54  ;;  %v2587_v56 = vld [vmem:[%s7027_s1 + $0x60] sm:$0xff]  ;;  %v2585_v2 = vld [vmem:[%s7027_s1 + $0x50] sm:$0xff] }
 0x213   :  { %v1240_v37 = vpop.f32.mrb[7].mxu0  ;;  %v2446_v53 = vpop.f32.mrb[7].mxu1  ;;  %5084 = vtanh.f32 %v2444_v12  ;;  %v2632_v46 = vmul.f32 %v5063_v31, %v2576_v9  ;;  %v2707_v48 = vand.u32 4294901760, %v2631_v28  ;;  %v2589_v44 = vld [vmem:[%s7027_s1 + $0x70] sm:$0xff]  ;;  %v2588_v31 = vld [vmem:[%s7027_s1 + $0x68] sm:$0xff] }
 0x214   :  { %v5065_v23 = vpop.eup %5064  ;;  %5086 = vtanh.f32 %v1240_v37  ;;  %v3510_v62 = vand.u32 4294901760, %v2633_v21 }
 0x215   :  { %v5067_v49 = vpop.eup %5066  ;;  %v2634_v60 = vmul.f32 %v5065_v23, %v2578_v36  ;;  %5088 = vtanh.f32 %v2446_v53  ;;  %v1245_v19 = vpop.f32.mrb[8].mxu0  ;;  %v2705_v5 = vand.u32 4294901760, %v2632_v46  ;;  %v6092_v57 = vsub.f32 %v2631_v28, %v2707_v48 }
 0x216   :  { %v5069_v18 = vpop.eup %5068  ;;  %v2451_v34 = vpop.f32.mrb[8].mxu1  ;;  %v2635_v55 = vmul.f32 %v5067_v49, %v2579_v17  ;;  %5090 = vtanh.f32 %v1245_v19  ;;  %v6094_v7 = vsub.f32 %v2633_v21, %v3510_v62 }
 0x217   :  { %v5071_v11 = vpop.eup %5070  ;;  %v1247_v29 = vpop.f32.mrb[9].mxu0  ;;  %v3508_v3 = vand.u32 4294901760, %v2634_v60  ;;  %v2637_v43 = vmul.f32 %v5069_v18, %v2581_v26  ;;  %5092 = vtanh.f32 %v2451_v34  ;;  %v6096_v16 = vsub.f32 %v2632_v46, %v2705_v5  ;;  %v2590_v46 = vld [vmem:[%s7027_s1 + $0x78] sm:$0xff] }
 0x218   :  { %v2453_v40 = vpop.f32.mrb[9].mxu1  ;;  %v5073_v33 = vpop.eup %5072  ;;  %v2636_v50 = vmul.f32 %v5071_v11, %v2580_v58  ;;  %v2711_v22 = vand.u32 4294901760, %v2635_v55  ;;  %5094 = vtanh.f32 %v1247_v29 }
 0x219   :  { %v5075_v14 = vpop.eup %5074  ;;  %v2638_v1 = vmul.f32 %v5073_v33, %v2582_v4  ;;  %v6098_v6 = vsub.f32 %v2634_v60, %v3508_v3  ;;  %v3514_v20 = vand.u32 4294901760, %v2637_v43  ;;  %5096 = vtanh.f32 %v2453_v40  ;;  %v1252_v38 = vpop.f32.mrb[10].mxu0 }
 0x21a   :  { %v5077_v24 = vpop.eup %5076  ;;  %v2458_v47 = vpop.f32.mrb[10].mxu1  ;;  %v2709_v59 = vand.u32 4294901760, %v2636_v50  ;;  %v6103_v61 = vpack.c.bf16 %v2711_v22, %v2707_v48  ;;  %v6105_v63 = vsub.f32 %v2635_v55, %v2711_v22  ;;  %5098 = vtanh.f32 %v1252_v38 }
 0x21b   :  { %v5079_v25 = vpop.eup %5078  ;;  %v1254_v35 = vpop.f32.mrb[11].mxu0  ;;  %v3512_v27 = vand.u32 4294901760, %v2638_v1  ;;  %v6110_v15 = vpack.c.bf16 %v3514_v20, %v3510_v62  ;;  %v6112_v32 = vsub.f32 %v2637_v43, %v3514_v20  ;;  %5100 = vtanh.f32 %v2458_v47 }
 0x21c   :  { %7336 = vst [vmem:[#allocation8_spill] sm:$0xff] %v6103_v61  ;;  %v2460_v41 = vpop.f32.mrb[11].mxu1  ;;  %v5081_v54 = vpop.eup %5080  ;;  %v6120_v42 = vpack.c.bf16 %v2709_v59, %v2705_v5  ;;  %v6122_v9 = vsub.f32 %v2636_v50, %v2709_v59  ;;  %v2640_v52 = vmul.f32 %v5079_v25, %v2584_v39  ;;  %5102 = vtanh.f32 %v1254_v35 }
 0x21d   :  { %7337 = vst [vmem:[#allocation10_spill] sm:$0xff] %v6110_v15  ;;  %v5083_v12 = vpop.eup %5082  ;;  %v6130_v36 = vpack.c.bf16 %v3512_v27, %v3508_v3  ;;  %v6132_v28 = vsub.f32 %v2638_v1, %v3512_v27  ;;  %v2642_v37 = vmul.f32 %v5081_v54, %v2586_v10  ;;  %5104 = vtanh.f32 %v2460_v41  ;;  %v1259_v17 = vpop.f32.mrb[12].mxu0  ;;  %v2592_v10 = vld [vmem:[%s7027_s1 + $0x88] sm:$0xff]  ;;  %v2595_v54 = vld [vmem:[%s7027_s1 + $0xa0] sm:$0xff] }
 0x21e   :  { %7338 = vst [vmem:[#allocation13_spill] sm:$0xff] %v6120_v42  ;;  %v5085_v53 = vpop.eup %5084  ;;  %4422 = vmatprep.subr.bf16.mxu0 %v6120_v42  ;;  %v2465_v21 = vpop.f32.mrb[12].mxu1  ;;  %v2713_v23 = vand.u32 4294901760, %v2640_v52  ;;  %v2639_v48 = vmul.f32 %v5075_v14, %v2583_v51  ;;  %v2643_v26 = vmul.f32 %v5083_v12, %v2587_v56  ;;  %5106 = vtanh.f32 %v1259_v17  ;;  %v2594_v51 = vld [vmem:[%s7027_s1 + $0x98] sm:$0xff]  ;;  %v2591_v56 = vld [vmem:[%s7027_s1 + $0x80] sm:$0xff] }
 0x21f   :  { %7339 = vst [vmem:[#allocation15_spill] sm:$0xff] %v6130_v36  ;;  %v5087_v49 = vpop.eup %5086  ;;  %4590 = vmatprep.subr.bf16.mxu1 %v6130_v36  ;;  %4424 = vmatpush1.bf16.msra.mxu0 %v6103_v61  ;;  %v1261_v58 = vpop.f32.mrb[13].mxu0  ;;  %v3516_v62 = vand.u32 4294901760, %v2642_v37  ;;  %v2641_v18 = vmul.f32 %v5077_v24, %v2585_v2  ;;  %v2645_v19 = vmul.f32 %v5085_v53, %v2589_v44  ;;  %5108 = vtanh.f32 %v2465_v21 }
 0x220   :  { %v2467_v60 = vpop.f32.mrb[13].mxu1  ;;  %v5089_v34 = vpop.eup %5088  ;;  %4592 = vmatpush1.bf16.msra.mxu1 %v6110_v15  ;;  %v2644_v5 = vmul.f32 %v5087_v49, %v2588_v31  ;;  %v6144_v4 = vsub.f32 %v2640_v52, %v2713_v23  ;;  %v2715_v55 = vand.u32 4294901760, %v2639_v48  ;;  %5110 = vtanh.f32 %v1261_v58  ;;  %v2596_v31 = vld [vmem:[%s7027_s1 + $0xa8] sm:$0xff] }
 0x221   :  { %v5091_v11 = vpop.eup %5090  ;;  %v2646_v29 = vmul.f32 %v5089_v34, %v2590_v46  ;;  %v6146_v40 = vsub.f32 %v2642_v37, %v3516_v62  ;;  %v2719_v3 = vand.u32 4294901760, %v2643_v26  ;;  %5112 = vtanh.f32 %v2467_v60  ;;  %v1266_v33 = vpop.f32.mrb[14].mxu0  ;;  %v2593_v37 = vld [vmem:[%s7027_s1 + $0x90] sm:$0xff] }
 0x222   :  { %v5093_v43 = vpop.eup %5092  ;;  %v2472_v50 = vpop.f32.mrb[14].mxu1  ;;  %v2717_v22 = vand.u32 4294901760, %v2644_v5  ;;  %v6148_v14 = vsub.f32 %v2639_v48, %v2715_v55  ;;  %v3518_v1 = vand.u32 4294901760, %v2641_v18  ;;  %5114 = vtanh.f32 %v1266_v33 }
 0x223   :  { %v5095_v20 = vpop.eup %5094  ;;  %v1268_v39 = vpop.f32.mrb[15].mxu0  ;;  %v3520_v38 = vand.u32 4294901760, %v2646_v29  ;;  %v6150_v47 = vpack.c.bf16 %v2719_v3, %v2715_v55  ;;  %v6152_v59 = vsub.f32 %v2643_v26, %v2719_v3  ;;  %5116 = vtanh.f32 %v2472_v50  ;;  %v2598_v26 = vld [vmem:[%s7027_s1 + $0xb8] sm:$0xff] }
 0x224   :  { %v2474_v24 = vpop.f32.mrb[15].mxu1  ;;  %v5097_v25 = vpop.eup %5096  ;;  %v6157_v35 = vpack.c.bf16 %v2717_v22, %v2713_v23  ;;  %v6159_v41 = vsub.f32 %v2644_v5, %v2717_v22  ;;  %v3522_v27 = vand.u32 4294901760, %v2645_v19  ;;  %5118 = vtanh.f32 %v1268_v39 }
 0x225   :  { %7340 = vst [vmem:[#allocation19_spill] sm:$0xff] %v6150_v47  ;;  %v5099_v52 = vpop.eup %5098  ;;  %v6170_v2 = vpack.c.bf16 %v3520_v38, %v3516_v62  ;;  %v6172_v44 = vsub.f32 %v2646_v29, %v3520_v38  ;;  %v6174_v12 = vsub.f32 %v2641_v18, %v3518_v1  ;;  %5120 = vtanh.f32 %v2474_v24  ;;  %v1273_v17 = vpop.f32.mrb[16].mxu0 }
 0x226   :  { %7341 = vst [vmem:[#allocation21_spill] sm:$0xff] %v6157_v35  ;;  %v6182_v53 = vpop.eup %5100  ;;  %4426 = vmatprep.subr.bf16.mxu0 %v6157_v35  ;;  %v2479_v21 = vpop.f32.mrb[16].mxu1  ;;  %v6185_v23 = vpack.c.bf16 %v3522_v27, %v3518_v1  ;;  %v6187_v46 = vsub.f32 %v2645_v19, %v3522_v27  ;;  %v2648_v48 = vmul.f32 %v5095_v20, %v2592_v10  ;;  %5122 = vtanh.f32 %v1273_v17 }
 0x227   :  { %7342 = vst [vmem:[#allocation23_spill] sm:$0xff] %v6170_v2  ;;  %v5103_v49 = vpop.eup %5102  ;;  %4594 = vmatprep.subr.bf16.mxu1 %v6170_v2  ;;  %4428 = vmatpush1.bf16.msra.mxu0 %v6150_v47  ;;  %v1275_v58 = vpop.f32.mrb[17].mxu0  ;;  %v2650_v62 = vmul.f32 %v5097_v25, %v2594_v51  ;;  %v2647_v18 = vmul.f32 %v5091_v11, %v2591_v56  ;;  %5124 = vtanh.f32 %v2479_v21 }
 0x228   :  { %7343 = vst [vmem:[#allocation4_spill] sm:$0xff] %v6185_v23  ;;  %7344 = vst [vmem:[#allocation5_spill] sm:$0xff] %v6187_v46  ;;  %v2481_v60 = vpop.f32.mrb[17].mxu1  ;;  %v2651_v34 = vmul.f32 %v5099_v52, %v2595_v54  ;;  %v5105_v5 = vpop.eup %5104  ;;  %4596 = vmatpush1.bf16.msra.mxu1 %v6185_v23  ;;  %v2652_v19 = vmul.f32 %v5103_v49, %v2596_v31  ;;  %v2721_v55 = vand.u32 4294901760, %v2648_v48  ;;  %5126 = vtanh.f32 %v1275_v58  ;;  %v2597_v54 = vld [vmem:[%s7027_s1 + $0xb0] sm:$0xff]  ;;  %v2600_v52 = vld [vmem:[%s7027_s1 + $0xc8] sm:$0xff] }
 0x229   :  { %v6195_v29 = vmul.f32 %v5093_v43, %v2593_v37  ;;  %v5107_v3 = vpop.eup %5106  ;;  %v2654_v33 = vmul.f32 %v5105_v5, %v2598_v26  ;;  %v3524_v50 = vand.u32 4294901760, %v2650_v62  ;;  %v2723_v22 = vand.u32 4294901760, %v2647_v18  ;;  %v1280_v20 = vpop.f32.mrb[18].mxu0  ;;  %v2599_v26 = vld [vmem:[%s7027_s1 + $0xc0] sm:$0xff]  ;;  %v2604_v5 = vld [vmem:[%s7027_s1 + $0xe8] sm:$0xff] }
 0x22a   :  { %v6197_v1 = vpop.eup %5108  ;;  %5128 = vtanh.f32 %v2481_v60  ;;  %v2486_v39 = vpop.f32.mrb[18].mxu1  ;;  %v2725_v11 = vand.u32 4294901760, %v2652_v19  ;;  %v6199_v24 = vsub.f32 %v2648_v48, %v2721_v55  ;;  %v2727_v38 = vand.u32 4294901760, %v2651_v34  ;;  %v2602_v48 = vld [vmem:[%s7027_s1 + $0xd8] sm:$0xff]  ;;  %v2603_v49 = vld [vmem:[%s7027_s1 + $0xe0] sm:$0xff] }
 0x22b   :  { %v5111_v10 = vpop.eup %5110  ;;  %5130 = vtanh.f32 %v1280_v20  ;;  %v1282_v25 = vpop.f32.mrb[19].mxu0  ;;  %v3528_v43 = vand.u32 4294901760, %v2654_v33  ;;  %v6201_v51 = vsub.f32 %v2650_v62, %v3524_v50  ;;  %v6203_v56 = vsub.f32 %v2647_v18, %v2723_v22 }
 0x22c   :  { %7345 = vst [vmem:[#allocation7_spill] sm:$0xff] %v6199_v24  ;;  %v2488_v27 = vpop.f32.mrb[19].mxu1  ;;  %v5113_v31 = vpop.eup %5112  ;;  %5132 = vtanh.f32 %v2486_v39  ;;  %v6211_v37 = vpack.c.bf16 %v2725_v11, %v2721_v55  ;;  %v6213_v17 = vsub.f32 %v2652_v19, %v2725_v11  ;;  %v6215_v21 = vpack.c.bf16 %v2727_v38, %v2723_v22 }
 0x22d   :  { %7346 = vst [vmem:[#allocation9_spill] sm:$0xff] %v6201_v51  ;;  %7347 = vst [vmem:[#allocation11_spill] sm:$0xff] %v6203_v56  ;;  %v5115_v58 = vpop.eup %5114  ;;  %5134 = vtanh.f32 %v1282_v25  ;;  %v6226_v60 = vpack.c.bf16 %v3528_v43, %v3524_v50  ;;  %v6228_v62 = vsub.f32 %v2654_v33, %v3528_v43  ;;  %v6230_v18 = vsub.f32 %v2651_v34, %v2727_v38  ;;  %v1287_v55 = vpop.f32.mrb[20].mxu0  ;;  %v2606_v34 = vld [vmem:[%s7027_s1 + $0xf8] sm:$0xff] }
 0x22e   :  { %7348 = vst [vmem:[#allocation12_spill] sm:$0xff] %v6211_v37  ;;  %7349 = vst [vmem:[#allocation14_spill] sm:$0xff] %v6213_v17  ;;  %v6235_v19 = vpop.eup %5116  ;;  %5136 = vtanh.f32 %v2488_v27  ;;  %4430 = vmatprep.subr.bf16.mxu0 %v6211_v37  ;;  %v2493_v22 = vpop.f32.mrb[20].mxu1  ;;  %v2653_v20 = vmul.f32 %v6182_v53, %v2597_v54  ;;  %v3526_v50 = vand.u32 4294901760, %v6195_v29  ;;  %v2656_v39 = vmul.f32 %v5111_v10, %v2600_v52 }
 0x22f   :  { %7350 = vst [vmem:[#allocation16_spill] sm:$0xff] %v6215_v21  ;;  %7351 = vst [vmem:[#allocation17_spill] sm:$0xff] %v6226_v60  ;;  %v5119_v33 = vpop.eup %5118  ;;  %4598 = vmatprep.subr.bf16.mxu1 %v6226_v60  ;;  %5138 = vtanh.f32 %v1287_v55  ;;  %4432 = vmatpush1.bf16.msra.mxu0 %v6215_v21  ;;  %v1289_v11 = vpop.f32.mrb[21].mxu0  ;;  %v2658_v25 = vmul.f32 %v5113_v31, %v2602_v48  ;;  %v2655_v27 = vmul.f32 %v5107_v3, %v2599_v26 }
 0x230   :  { %7352 = vst [vmem:[#allocation18_spill] sm:$0xff] %v6228_v62  ;;  %7353 = vst [vmem:[#allocation20_spill] sm:$0xff] %v6230_v18  ;;  %v2495_v38 = vpop.f32.mrb[21].mxu1  ;;  %v2659_v43 = vmul.f32 %v5115_v58, %v2603_v49  ;;  %v5121_v13 = vpop.eup %5120  ;;  %5140 = vtanh.f32 %v2493_v22  ;;  %v3530_v53 = vand.u32 4294901760, %v2653_v20  ;;  %v6246_v10 = vsub.f32 %v6195_v29, %v3526_v50 }
 0x231   :  { %v2660_v54 = vmul.f32 %v5119_v33, %v2604_v5  ;;  %v6248_v52 = vpop.eup %5122  ;;  %5142 = vtanh.f32 %v1289_v11  ;;  %v2729_v23 = vand.u32 4294901760, %v2656_v39  ;;  %v2662_v60 = vmul.f32 %v5121_v13, %v2606_v34  ;;  %v1294_v3 = vpop.f32.mrb[22].mxu0  ;;  %v2601_v13 = vld [vmem:[%s7027_s1 + $0xd0] sm:$0xff] }
 0x232   :  { %7354 = vst [vmem:[#allocation22_spill] sm:$0xff] %v6246_v10  ;;  %v3532_v55 = vand.u32 4294901760, %v2658_v25  ;;  %v6250_v37 = vpop.eup %5124  ;;  %v6252_v21 = vpack.c.bf16 %v3530_v53, %v3526_v50  ;;  %v6254_v31 = vsub.f32 %v2653_v20, %v3530_v53  ;;  %5144 = vtanh.f32 %v2495_v38  ;;  %v2500_v48 = vpop.f32.mrb[22].mxu1  ;;  %v2605_v20 = vld [vmem:[%s7027_s1 + $0xf0] sm:$0xff]  ;;  %v2608_v38 = vld [vmem:[%s7027_s1 + $0x108] sm:$0xff] }
 0x233   :  { %v2733_v26 = vand.u32 4294901760, %v2660_v54  ;;  %v5127_v49 = vpop.eup %5126  ;;  %5146 = vtanh.f32 %v1294_v3  ;;  %v1296_v29 = vpop.f32.mrb[23].mxu0  ;;  %v6256_v5 = vsub.f32 %v2656_v39, %v2729_v23  ;;  %v3536_v22 = vand.u32 4294901760, %v2662_v60 }
 0x234   :  { %7355 = vst [vmem:[#allocation24_spill] sm:$0xff] %v6252_v21  ;;  %7356 = vst [vmem:[#allocation25_spill] sm:$0xff] %v6254_v31  ;;  %v2502_v58 = vpop.f32.mrb[23].mxu1  ;;  %v6258_v33 = vsub.f32 %v2658_v25, %v3532_v55  ;;  %v5129_v50 = vpop.eup %5128  ;;  %4600 = vmatpush1.bf16.msra.mxu1 %v6252_v21  ;;  %5148 = vtanh.f32 %v2500_v48  ;;  %v2731_v39 = vand.u32 4294901760, %v2655_v27  ;;  %v2735_v47 = vand.u32 4294901760, %v2659_v43  ;;  %v2612_v48 = vld [vmem:[%s7027_s1 + $0x128] sm:$0xff] }
 0x235   :  { %7357 = vst [vmem:[#allocation26_spill] sm:$0xff] %v6256_v5  ;;  %v6267_v34 = vpack.c.bf16 %v2733_v26, %v2729_v23  ;;  %v6269_v11 = vsub.f32 %v2660_v54, %v2733_v26  ;;  %v5131_v25 = vpop.eup %5130  ;;  %5150 = vtanh.f32 %v1296_v29  ;;  %v6274_v53 = vpack.c.bf16 %v3536_v22, %v3532_v55  ;;  %v1301_v54 = vpop.f32.mrb[24].mxu0 }
 0x236   :  { %v6276_v3 = vsub.f32 %v2662_v60, %v3536_v22  ;;  %v6281_v23 = vpop.eup %5132  ;;  %5152 = vtanh.f32 %v2502_v58  ;;  %v2507_v26 = vpop.f32.mrb[24].mxu1  ;;  %v6284_v21 = vsub.f32 %v2655_v27, %v2731_v39  ;;  %v2657_v29 = vmul.f32 %v6197_v1, %v2601_v13  ;;  %v2610_v60 = vld [vmem:[%s7027_s1 + $0x118] sm:$0xff] }
 0x237   :  { %7358 = vst [vmem:[#allocation27_spill] sm:$0xff] %v6267_v34  ;;  %7359 = vst [vmem:[#allocation28_spill] sm:$0xff] %v6269_v11  ;;  %4434 = vmatprep.subr.bf16.mxu0 %v6267_v34  ;;  %v2661_v55 = vmul.f32 %v6235_v19, %v2605_v20  ;;  %v2614_v22 = vld [vmem:[%s7027_s1 + $0x138] sm:$0xff]  ;;  %v5135_v2 = vpop.eup %5134  ;;  %4602 = vmatprep.subr.bf16.mxu1 %v6274_v53  ;;  %5154 = vtanh.f32 %v1301_v54  ;;  %v6295_v58 = vpack.c.bf16 %v2735_v47, %v2731_v39  ;;  %v1303_v34 = vpop.f32.mrb[25].mxu0 }
 0x238   :  { %7360 = vst [vmem:[#allocation29_spill] sm:$0xff] %v6274_v53  ;;  %7361 = vst [vmem:[#allocation30_spill] sm:$0xff] %v6276_v3  ;;  %v6297_v27 = vsub.f32 %v2659_v43, %v2735_v47  ;;  %v2509_v1 = vpop.f32.mrb[25].mxu1  ;;  %v2664_v13 = vmul.f32 %v5127_v49, %v2608_v38  ;;  %v5137_v19 = vpop.eup %5136  ;;  %5156 = vtanh.f32 %v2507_v26  ;;  %v3534_v20 = vand.u32 4294901760, %v2657_v29  ;;  %v2607_v47 = vld [vmem:[%s7027_s1 + $0x100] sm:$0xff] }
 0x239   :  { %7362 = vst [vmem:[#allocation31_spill] sm:$0xff] %v6295_v58  ;;  %v3538_v15 = vand.u32 4294901760, %v2661_v55  ;;  %v2668_v35 = vmul.f32 %v5135_v2, %v2612_v48  ;;  %v5139_v61 = vpop.eup %5138  ;;  %4436 = vmatpush1.bf16.msra.mxu0 %v6295_v58  ;;  %5158 = vtanh.f32 %v1303_v34  ;;  %v2666_v36 = vmul.f32 %v5129_v50, %v2610_v60  ;;  %v2611_v43 = vld [vmem:[%s7027_s1 + $0x120] sm:$0xff]  ;;  %v1308_v34 = vpop.f32.mrb[26].mxu0 }
 0x23a   :  { %7363 = vst [vmem:[#allocation32_spill] sm:$0xff] %v6297_v27  ;;  %v2737_v0 = vand.u32 4294901760, %v2664_v13  ;;  %v2670_v53 = vmul.f32 %v5137_v19, %v2614_v22  ;;  %v6306_v49 = vpop.eup %5140  ;;  %v6310_v2 = vsub.f32 %v2657_v29, %v3534_v20  ;;  %5160 = vtanh.f32 %v2509_v1  ;;  %v2514_v50 = vpop.f32.mrb[26].mxu1  ;;  %v2613_v1 = vld [vmem:[%s7027_s1 + $0x130] sm:$0xff] }
 0x23b   :  { %v6308_v39 = vpack.c.bf16 %v3538_v15, %v3534_v20  ;;  %v6312_v38 = vsub.f32 %v2661_v55, %v3538_v15  ;;  %v5143_v48 = vpop.eup %5142  ;;  %5162 = vtanh.f32 %v1308_v34  ;;  %v1310_v54 = vpop.f32.mrb[27].mxu0  ;;  %v2741_v60 = vand.u32 4294901760, %v2668_v35  ;;  %v2609_v55 = vld [vmem:[%s7027_s1 + $0x110] sm:$0xff] }
 0x23c   :  { %7365 = vst [vmem:[#allocation34_spill] sm:$0xff] %v6310_v2  ;;  %v2516_v26 = vpop.f32.mrb[27].mxu1  ;;  %v6314_v22 = vsub.f32 %v2664_v13, %v2737_v0  ;;  %v3540_v19 = vand.u32 4294901760, %v2666_v36  ;;  %v5145_v58 = vpop.eup %5144  ;;  %5164 = vtanh.f32 %v2514_v50  ;;  %v3544_v42 = vand.u32 4294901760, %v2670_v53  ;;  %v2616_v13 = vld [vmem:[%s7027_s1 + $0x148] sm:$0xff] }
 0x23d   :  { %7364 = vst [vmem:[#allocation33_spill] sm:$0xff] %v6308_v39  ;;  %7366 = vst [vmem:[#allocation35_spill] sm:$0xff] %v6312_v38  ;;  %4604 = vmatpush1.bf16.msra.mxu1 %v6308_v39  ;;  %v2663_v29 = vmul.f32 %v6248_v52, %v2607_v47  ;;  %v2667_v15 = vmul.f32 %v5131_v25, %v2611_v43  ;;  %v5147_v20 = vpop.eup %5146  ;;  %5166 = vtanh.f32 %v1310_v54  ;;  %v2620_v25 = vld [vmem:[%s7027_s1 + $0x168] sm:$0xff]  ;;  %v2618_v47 = vld [vmem:[%s7027_s1 + $0x158] sm:$0xff] }
 0x23e   :  { %7367 = vst [vmem:[#allocation36_spill] sm:$0xff] %v6314_v22  ;;  %v6327_v34 = vpack.c.bf16 %v2741_v60, %v2737_v0  ;;  %v6329_v50 = vsub.f32 %v2668_v35, %v2741_v60  ;;  %v6331_v52 = vsub.f32 %v2666_v36, %v3540_v19  ;;  %v2615_v43 = vld [vmem:[%s7027_s1 + $0x140] sm:$0xff]  ;;  %v5149_v39 = vpop.eup %5148  ;;  %5168 = vtanh.f32 %v2516_v26  ;;  %v2622_v22 = vld [vmem:[%s7027_s1 + $0x178] sm:$0xff] }
 0x23f   :  { %v6342_v0 = vpack.c.bf16 %v3544_v42, %v3540_v19  ;;  %v6344_v35 = vsub.f32 %v2670_v53, %v3544_v42  ;;  %v2739_v36 = vand.u32 4294901760, %v2663_v29  ;;  %v5151_v54 = vpop.eup %5150  ;;  %v2743_v60 = vand.u32 4294901760, %v2667_v15 }
 0x240   :  { %7368 = vst [vmem:[#allocation37_spill] sm:$0xff] %v6327_v34  ;;  %7369 = vst [vmem:[#allocation38_spill] sm:$0xff] %v6329_v50  ;;  %4438 = vmatprep.subr.bf16.mxu0 %v6327_v34  ;;  %v2665_v45 = vmul.f32 %v6250_v37, %v2609_v55  ;;  %v2672_v50 = vmul.f32 %v5143_v48, %v2616_v13  ;;  %v5153_v26 = vpop.eup %5152  ;;  %v2676_v53 = vmul.f32 %v5151_v54, %v2620_v25  ;;  %v2619_v34 = vld [vmem:[%s7027_s1 + $0x160] sm:$0xff] }
 0x241   :  { %7370 = vst [vmem:[#allocation39_spill] sm:$0xff] %v6331_v52  ;;  %7371 = vst [vmem:[#allocation40_spill] sm:$0xff] %v6342_v0  ;;  %v2669_v52 = vmul.f32 %v6281_v23, %v2613_v1  ;;  %4606 = vmatprep.subr.bf16.mxu1 %v6342_v0  ;;  %v6353_v42 = vsub.f32 %v2663_v29, %v2739_v36  ;;  %v2674_v19 = vmul.f32 %v5145_v58, %v2618_v47  ;;  %v5155_v37 = vpop.eup %5154  ;;  %v2617_v58 = vld [vmem:[%s7027_s1 + $0x150] sm:$0xff] }
 0x242   :  { %7372 = vst [vmem:[#allocation41_spill] sm:$0xff] %v6344_v35  ;;  %v2671_v35 = vmul.f32 %v5139_v61, %v2615_v43  ;;  %v6358_v55 = vpack.c.bf16 %v2743_v60, %v2739_v36  ;;  %v6360_v23 = vsub.f32 %v2667_v15, %v2743_v60  ;;  %v3542_v48 = vand.u32 4294901760, %v2665_v45  ;;  %v6362_v13 = vpop.eup %5156  ;;  %v2627_v61 = vld [vmem:[%s7027_s1 + $0x1a0] sm:$0xf]  ;;  %v2629_v60 = vld [vmem:[%s7027_s1 + $0x1b0] sm:$0xf] }
 0x243   :  { %7373 = vst [vmem:[#allocation42_spill] sm:$0xff] %v6353_v42  ;;  %v3546_v1 = vand.u32 4294901760, %v2669_v52  ;;  %v2745_v38 = vand.u32 4294901760, %v2672_v50  ;;  %v2749_v0 = vand.u32 4294901760, %v2676_v53  ;;  %v2678_v29 = vmul.f32 %v5153_v26, %v2622_v22  ;;  %v5159_v25 = vpop.eup %5158  ;;  %v2621_v22 = vld [vmem:[%s7027_s1 + $0x170] sm:$0xff] }
 0x244   :  { %7374 = vst [vmem:[#allocation43_spill] sm:$0xff] %v6358_v55  ;;  %7375 = vst [vmem:[#allocation44_spill] sm:$0xff] %v6360_v23  ;;  %v3548_v42 = vand.u32 4294901760, %v2674_v19  ;;  %4440 = vmatpush1.bf16.msra.mxu0 %v6358_v55  ;;  %v6373_v47 = vsub.f32 %v2665_v45, %v3542_v48  ;;  %v2675_v36 = vmul.f32 %v5147_v20, %v2619_v34  ;;  %v5161_v54 = vpop.eup %5160  ;;  %v2747_v34 = vand.u32 4294901760, %v2671_v35 }
 0x245   :  { %v6371_v15 = vpack.c.bf16 %v3546_v1, %v3542_v48  ;;  %v6375_v43 = vsub.f32 %v2669_v52, %v3546_v1  ;;  %v6383_v26 = vpack.c.bf16 %v2749_v0, %v2745_v38  ;;  %v6385_v23 = vsub.f32 %v2672_v50, %v2745_v38  ;;  %v5163_v48 = vpop.eup %5162  ;;  %v2628_v38 = vld [vmem:[%s7027_s1 + $0x1a8] sm:$0xf] }
 0x246   :  { %7377 = vst [vmem:[#allocation46_spill] sm:$0xff] %v6373_v47  ;;  %v6387_v55 = vsub.f32 %v2676_v53, %v2749_v0  ;;  %v3552_v45 = vand.u32 4294901760, %v2678_v29  ;;  %v6390_v20 = vsub.f32 %v2674_v19, %v3548_v42  ;;  %v2751_v52 = vand.u32 4294901760, %v2675_v36  ;;  %v5165_v50 = vpop.eup %5164 }
 0x247   :  { %7376 = vst [vmem:[#allocation45_spill] sm:$0xff] %v6371_v15  ;;  %7378 = vst [vmem:[#allocation47_spill] sm:$0xff] %v6375_v43  ;;  %4608 = vmatpush1.bf16.msra.mxu1 %v6371_v15  ;;  %v2673_v1 = vmul.f32 %v6306_v49, %v2617_v58  ;;  %v2624_v43 = vld [vmem:[%s7027_s1 + $0x188] sm:$0xff]  ;;  %v2683_v0 = vmul.f32 %v5163_v48, %v2627_v61  ;;  %4442 = vmatprep.subr.bf16.mxu0 %v6383_v26  ;;  %v2626_v49 = vld [vmem:[%s7027_s1 + $0x198] sm:$0xff]  ;;  %v5167_v61 = vpop.eup %5166 }
 0x248   :  { %7379 = vst [vmem:[#allocation48_spill] sm:$0xff] %v6383_v26  ;;  %7380 = vst [vmem:[#allocation49_spill] sm:$0xff] %v6385_v23  ;;  %v6400_v53 = vpack.c.bf16 %v3552_v45, %v3548_v42  ;;  %v6402_v19 = vsub.f32 %v2678_v29, %v3552_v45  ;;  %v2677_v15 = vmul.f32 %v5149_v39, %v2621_v22  ;;  %v2630_v58 = vld [vmem:[%s7027_s1 + $0x1b8] sm:$0xf]  ;;  %v5169_v39 = vpop.eup %5168 }
 0x249   :  { %7381 = vst [vmem:[#allocation50_spill] sm:$0xff] %v6387_v55  ;;  %7382 = vst [vmem:[#allocation51_spill] sm:$0xff] %v6390_v20  ;;  %v2623_v20 = vld [vmem:[%s7027_s1 + $0x180] sm:$0xff]  ;;  %v2685_v48 = vmul.f32 %v5165_v50, %v2629_v60  ;;  %v6413_v26 = vpack.c.bf16 %v2751_v52, %v2747_v34  ;;  %v6415_v42 = vsub.f32 %v2671_v35, %v2747_v34  ;;  %v3550_v22 = vand.u32 4294901760, %v2673_v1  ;;  %v2625_v35 = vld [vmem:[%s7027_s1 + $0x190] sm:$0xff] }
 0x24a   :  { %7383 = vst [vmem:[#allocation52_spill] sm:$0xff] %v6400_v53  ;;  %7384 = vst [vmem:[#allocation53_spill] sm:$0xff] %v6402_v19  ;;  %v6417_v29 = vsub.f32 %v2675_v36, %v2751_v52  ;;  %4610 = vmatprep.subr.bf16.mxu1 %v6400_v53  ;;  %v3554_v45 = vand.u32 4294901760, %v2677_v15  ;;  %v2680_v19 = vmul.f32 %v5159_v25, %v2624_v43  ;;  %v2694_v60 = vsel %vm2692_vm3, %v2683_v0, 0  ;;  %v7402_v53 = vld [vmem:[#allocation38_spill] sm:$0xff] }
 0x24b   :  { %7385 = vst [vmem:[#allocation54_spill] sm:$0xff] %v6413_v26  ;;  %v2684_v55 = vmul.f32 %v5167_v61, %v2628_v38  ;;  %4444 = vmatpush1.bf16.msra.mxu0 %v6413_v26  ;;  %v2682_v23 = vmul.f32 %v5161_v54, %v2626_v49  ;;  %v2686_v47 = vmul.f32 %v5169_v39, %v2630_v58  ;;  %v2759_v0 = vand.u32 4294901760, %v2694_v60 }
 0x24c   :  { %7386 = vst [vmem:[#allocation55_spill] sm:$0xff] %v6417_v29  ;;  %v2679_v2 = vmul.f32 %v5155_v37, %v2623_v20  ;;  %v6425_v36 = vpack.c.bf16 %v3554_v45, %v3550_v22  ;;  %v6427_v34 = vsub.f32 %v2673_v1, %v3550_v22  ;;  %v6429_v52 = vsub.f32 %v2677_v15, %v3554_v45 }
 0x24d   :  { %v2697_v25 = vsel %vm2692_vm3, %v2684_v55, 0  ;;  %v2753_v43 = vand.u32 4294901760, %v2680_v19  ;;  %v2703_v54 = vsel %vm2692_vm3, %v2686_v47, 0  ;;  %v3556_v50 = vand.u32 4294901760, %v2682_v23 }
 0x24e   :  { %7387 = vst [vmem:[#allocation56_spill] sm:$0xff] %v6425_v36  ;;  %7388 = vst [vmem:[#allocation57_spill] sm:$0xff] %v6429_v52  ;;  %v2757_v38 = vand.u32 4294901760, %v2697_v25  ;;  %4612 = vmatpush1.bf16.msra.mxu1 %v6425_v36  ;;  %v3560_v37 = vand.u32 4294901760, %v2703_v54  ;;  %v2755_v20 = vand.u32 4294901760, %v2679_v2  ;;  %v2681_v49 = vmul.f32 %v6362_v13, %v2625_v35 }
 0x24f   :  { %v6437_v1 = vsub.f32 %v2680_v19, %v2753_v43  ;;  %v6441_v61 = vsub.f32 %v2682_v23, %v3556_v50  ;;  %v6452_v45 = vsub.f32 %v2694_v60, %v2759_v0  ;;  %v2700_v13 = vsel %vm2692_vm3, %v2685_v48, 0 }
 0x250   :  { %v6435_v58 = vpack.c.bf16 %v2757_v38, %v2753_v43  ;;  %v6439_v15 = vsub.f32 %v2697_v25, %v2757_v38  ;;  %v6443_v55 = vpack.c.bf16 %v3560_v37, %v3556_v50  ;;  %v6445_v39 = vsub.f32 %v2703_v54, %v3560_v37 }
 0x251   :  { %7390 = vst [vmem:[#allocation59_spill] sm:$0xff] %v6437_v1  ;;  %v6447_v47 = vpack.c.bf16 %v2759_v0, %v2755_v20  ;;  %v6449_v22 = vsub.f32 %v2679_v2, %v2755_v20  ;;  %7396 = vst [vmem:[#allocation65_spill] sm:$0xff] %v6452_v45  ;;  %v3558_v19 = vand.u32 4294901760, %v2681_v49  ;;  %v7156_v35 = vand.u32 4294901760, %v6096_v16 }
 0x252   :  { %7389 = vst [vmem:[#allocation58_spill] sm:$0xff] %v6435_v58  ;;  %7391 = vst [vmem:[#allocation60_spill] sm:$0xff] %v6439_v15  ;;  %4446 = vmatprep.subr.bf16.mxu0 %v6435_v58  ;;  %4614 = vmatprep.subr.bf16.mxu1 %v6443_v55  ;;  %v3562_v23 = vand.u32 4294901760, %v2700_v13  ;;  %v7157_v25 = vand.u32 4294901760, %v6122_v9  ;;  %v7158_v43 = vand.u32 4294901760, %v6098_v6  ;;  %v7159_v2 = vand.u32 4294901760, %v6132_v28 }
 0x253   :  { %7392 = vst [vmem:[#allocation61_spill] sm:$0xff] %v6443_v55  ;;  %7393 = vst [vmem:[#allocation62_spill] sm:$0xff] %v6445_v39  ;;  %4448 = vmatpush1.bf16.msra.mxu0 %v6447_v47  ;;  %v6461_v38 = vsub.f32 %v2681_v49, %v3558_v19  ;;  %v2812_v48 = vsub.f32 %v6096_v16, %v7156_v35  ;;  %v7166_v60 = vand.u32 4294901760, %v6092_v57  ;;  %v7167_v54 = vand.u32 4294901760, %v6105_v63 }
 0x254   :  { %7394 = vst [vmem:[#allocation63_spill] sm:$0xff] %v6447_v47  ;;  %7395 = vst [vmem:[#allocation64_spill] sm:$0xff] %v6449_v22  ;;  %v6468_v50 = vpack.c.bf16 %v3562_v23, %v3558_v19  ;;  %v6470_v37 = vsub.f32 %v2700_v13, %v3562_v23  ;;  %v2824_v20 = vsub.f32 %v6122_v9, %v7157_v25  ;;  %v7177_v36 = vand.u32 4294901760, %v6144_v4 }
 0x255   :  { %v3615_v0 = vsub.f32 %v6098_v6, %v7158_v43  ;;  %v2813_v49 = vand.u32 4294901760, %v2812_v48  ;;  %v3627_v35 = vsub.f32 %v6132_v28, %v7159_v2  ;;  %v2818_v13 = vsub.f32 %v6092_v57, %v7166_v60 }
 0x256   :  { %7397 = vst [vmem:[#allocation66_spill] sm:$0xff] %v6468_v50  ;;  %7398 = vst [vmem:[#allocation67_spill] sm:$0xff] %v6470_v37  ;;  %2803 = vmatmul.mubr.f32.vlgmr.msra.gmra.mrb[28].mxu0 %v6087_v8  ;;  %v2830_v19 = vsub.f32 %v6105_v63, %v7167_v54  ;;  %4616 = vmatpush1.bf16.msra.mxu1 %v6468_v50  ;;  %v2825_v23 = vand.u32 4294901760, %v2824_v20  ;;  %v7179_v48 = vand.u32 4294901760, %v6094_v7  ;;  %v7172_v43 = vand.u32 4294901760, %v6112_v32 }
 0x257   :  { %v3616_v25 = vand.u32 4294901760, %v3615_v0  ;;  %3013 = vmatprep.mubr.f32.mxu0 %v7273_v30  ;;  %v3628_v2 = vand.u32 4294901760, %v3627_v35  ;;  %v2819_v47 = vand.u32 4294901760, %v2818_v13  ;;  %v7173_v0 = vand.u32 4294901760, %v6159_v41 }
 0x258   :  { %v2831_v55 = vand.u32 4294901760, %v2830_v19  ;;  %v4449_v60 = vpack.c.bf16 %v2825_v23, %v2813_v49  ;;  %v3621_v54 = vsub.f32 %v6094_v7, %v7179_v48  ;;  %v3633_v20 = vsub.f32 %v6112_v32, %v7172_v43 }
 0x259   :  { %v4617_v50 = vpack.c.bf16 %v3628_v2, %v3616_v25  ;;  %3606 = vmatmul.mubr.f32.vlgmr.msra.gmra.mrb[28].mxu1 %v6087_v8  ;;  %v2836_v35 = vsub.f32 %v6144_v4, %v7177_v36  ;;  %v7175_v49 = vand.u32 4294901760, %v6146_v40  ;;  %v2848_v23 = vsub.f32 %v6159_v41, %v7173_v0 }
 0x25a   :  { %v4451_v58 = vpack.c.bf16 %v2831_v55, %v2819_v47  ;;  %4450 = vmatprep.subr.bf16.mxu0 %v4449_v60  ;;  %v3622_v13 = vand.u32 4294901760, %v3621_v54  ;;  %v3634_v19 = vand.u32 4294901760, %v3633_v20  ;;  %v7174_v43 = vand.u32 4294901760, %v6172_v44  ;;  %3816 = vmatprep.mubr.f32.mxu1 %v7273_v30 }
 0x25b   :  { %4618 = vmatprep.subr.bf16.mxu1 %v4617_v50  ;;  %v2837_v8 = vand.u32 4294901760, %v2836_v35  ;;  %v3639_v55 = vsub.f32 %v6146_v40, %v7175_v49  ;;  %v7176_v47 = vand.u32 4294901760, %v6148_v14  ;;  %v7178_v25 = vand.u32 4294901760, %v6152_v59 }
 0x25c   :  { %4452 = vmatpush1.bf16.msra.mxu0 %v4451_v58  ;;  %v4619_v2 = vpack.c.bf16 %v3634_v19, %v3622_v13  ;;  %v2849_v60 = vand.u32 4294901760, %v2848_v23  ;;  %v3651_v54 = vsub.f32 %v6172_v44, %v7174_v43  ;;  %v7187_v20 = vand.u32 4294901760, %v6174_v12 }
 0x25d   :  { %v3640_v0 = vand.u32 4294901760, %v3639_v55  ;;  %v2842_v58 = vsub.f32 %v6148_v14, %v7176_v47  ;;  %v2854_v50 = vsub.f32 %v6152_v59, %v7178_v25  ;;  %v7180_v35 = vand.u32 4294901760, %v6187_v46 }
 0x25e   :  { %4620 = vmatpush1.bf16.msra.mxu1 %v4619_v2  ;;  %v4453_v13 = vpack.c.bf16 %v2849_v60, %v2837_v8  ;;  %v3652_v19 = vand.u32 4294901760, %v3651_v54  ;;  %v3645_v23 = vsub.f32 %v6174_v12, %v7187_v20  ;;  %v7185_v43 = vand.u32 4294901760, %v6199_v24 }
 0x25f   :  { %v2843_v55 = vand.u32 4294901760, %v2842_v58  ;;  %v2855_v49 = vand.u32 4294901760, %v2854_v50  ;;  %v3657_v47 = vsub.f32 %v6187_v46, %v7180_v35  ;;  %v7181_v36 = vand.u32 4294901760, %v6213_v17 }
 0x260   :  { %4454 = vmatprep.subr.bf16.mxu0 %v4453_v13  ;;  %v4621_v25 = vpack.c.bf16 %v3652_v19, %v3640_v0  ;;  %v3646_v48 = vand.u32 4294901760, %v3645_v23  ;;  %v2860_v8 = vsub.f32 %v6199_v24, %v7185_v43  ;;  %v7182_v2 = vand.u32 4294901760, %v6201_v51 }
 0x261   :  { %v4455_v60 = vpack.c.bf16 %v2855_v49, %v2843_v55  ;;  %v3658_v54 = vand.u32 4294901760, %v3657_v47  ;;  %v2872_v58 = vsub.f32 %v6213_v17, %v7181_v36  ;;  %v7183_v50 = vand.u32 4294901760, %v6228_v62 }
 0x262   :  { %4622 = vmatprep.subr.bf16.mxu1 %v4621_v25  ;;  %v2861_v35 = vand.u32 4294901760, %v2860_v8  ;;  %v3663_v0 = vsub.f32 %v6201_v51, %v7182_v2  ;;  %v7184_v13 = vand.u32 4294901760, %v6203_v56  ;;  %v7186_v19 = vand.u32 4294901760, %v6230_v18 }
 0x263   :  { %4456 = vmatpush1.bf16.msra.mxu0 %v4455_v60  ;;  %v4623_v23 = vpack.c.bf16 %v3658_v54, %v3646_v48  ;;  %v2873_v49 = vand.u32 4294901760, %v2872_v58  ;;  %v3675_v47 = vsub.f32 %v6228_v62, %v7183_v50  ;;  %v7192_v55 = vand.u32 4294901760, %v6246_v10 }
 0x264   :  { %v3664_v36 = vand.u32 4294901760, %v3663_v0  ;;  %v2866_v25 = vsub.f32 %v6203_v56, %v7184_v13  ;;  %v2878_v8 = vsub.f32 %v6230_v18, %v7186_v19  ;;  %v7188_v2 = vand.u32 4294901760, %v6254_v31 }
 0x265   :  { %4624 = vmatpush1.bf16.msra.mxu1 %v4623_v23  ;;  %v4457_v48 = vpack.c.bf16 %v2873_v49, %v2861_v35  ;;  %v3676_v60 = vand.u32 4294901760, %v3675_v47  ;;  %v3669_v54 = vsub.f32 %v6246_v10, %v7192_v55  ;;  %v7190_v58 = vand.u32 4294901760, %v6256_v5 }
 0x266   :  { %v2867_v0 = vand.u32 4294901760, %v2866_v25  ;;  %v2879_v50 = vand.u32 4294901760, %v2878_v8  ;;  %v3681_v13 = vsub.f32 %v6254_v31, %v7188_v2  ;;  %v7189_v43 = vand.u32 4294901760, %v6269_v11 }
 0x267   :  { %4458 = vmatprep.subr.bf16.mxu0 %v4457_v48  ;;  %v4625_v19 = vpack.c.bf16 %v3676_v60, %v3664_v36  ;;  %v3670_v20 = vand.u32 4294901760, %v3669_v54  ;;  %v2884_v35 = vsub.f32 %v6256_v5, %v7190_v58  ;;  %v7191_v23 = vand.u32 4294901760, %v6258_v33 }
 0x268   :  { %v4459_v49 = vpack.c.bf16 %v2879_v50, %v2867_v0  ;;  %v3682_v47 = vand.u32 4294901760, %v3681_v13  ;;  %v2896_v25 = vsub.f32 %v6269_v11, %v7189_v43  ;;  %v7193_v8 = vand.u32 4294901760, %v6276_v3  ;;  %v7399_v0 = vld [vmem:[#allocation34_spill] sm:$0xff] }
 0x269   :  { %4626 = vmatprep.subr.bf16.mxu1 %v4625_v19  ;;  %v2885_v2 = vand.u32 4294901760, %v2884_v35  ;;  %v3687_v36 = vsub.f32 %v6258_v33, %v7191_v23  ;;  %v7196_v48 = vand.u32 4294901760, %v6284_v21  ;;  %v7200_v60 = vand.u32 4294901760, %v6297_v27  ;;  %v7400_v23 = vld [vmem:[#allocation35_spill] sm:$0xff] }
 0x26a   :  { %4460 = vmatpush1.bf16.msra.mxu0 %v4459_v49  ;;  %v4627_v54 = vpack.c.bf16 %v3682_v47, %v3670_v20  ;;  %v2897_v50 = vand.u32 4294901760, %v2896_v25  ;;  %v3699_v13 = vsub.f32 %v6276_v3, %v7193_v8  ;;  %v7203_v43 = vand.u32 4294901760, %v7399_v0  ;;  %v7401_v25 = vld [vmem:[#allocation36_spill] sm:$0xff] }
 0x26b   :  { %v3688_v58 = vand.u32 4294901760, %v3687_v36  ;;  %v2890_v19 = vsub.f32 %v6284_v21, %v7196_v48  ;;  %v2902_v35 = vsub.f32 %v6297_v27, %v7200_v60  ;;  %v7205_v55 = vand.u32 4294901760, %v7400_v23 }
 0x26c   :  { %4628 = vmatpush1.bf16.msra.mxu1 %v4627_v54  ;;  %v4461_v20 = vpack.c.bf16 %v2897_v50, %v2885_v2  ;;  %v3700_v49 = vand.u32 4294901760, %v3699_v13  ;;  %v3693_v47 = vsub.f32 %v7399_v0, %v7203_v43  ;;  %v7206_v8 = vand.u32 4294901760, %v7401_v25  ;;  %v7403_v54 = vld [vmem:[#allocation39_spill] sm:$0xff] }
 0x26d   :  { %v2891_v36 = vand.u32 4294901760, %v2890_v19  ;;  %v2903_v26 = vand.u32 4294901760, %v2902_v35  ;;  %v3705_v48 = vsub.f32 %v7400_v23, %v7205_v55  ;;  %v7208_v30 = vand.u32 4294901760, %v7402_v53  ;;  %v7404_v35 = vld [vmem:[#allocation41_spill] sm:$0xff] }
 0x26e   :  { %4462 = vmatprep.subr.bf16.mxu0 %v4461_v20  ;;  %v4629_v60 = vpack.c.bf16 %v3700_v49, %v3688_v58  ;;  %v3694_v27 = vand.u32 4294901760, %v3693_v47  ;;  %v2908_v2 = vsub.f32 %v7401_v25, %v7206_v8  ;;  %v7210_v50 = vand.u32 4294901760, %v7403_v54  ;;  %v7405_v20 = vld [vmem:[#allocation42_spill] sm:$0xff]  ;;  %v7406_v47 = vld [vmem:[#allocation44_spill] sm:$0xff] }
 0x26f   :  { %v4463_v13 = vpack.c.bf16 %v2903_v26, %v2891_v36  ;;  %v3706_v43 = vand.u32 4294901760, %v3705_v48  ;;  %v2920_v19 = vsub.f32 %v7402_v53, %v7208_v30  ;;  %v7212_v0 = vand.u32 4294901760, %v7404_v35  ;;  %v7407_v36 = vld [vmem:[#allocation46_spill] sm:$0xff] }
 0x270   :  { %4630 = vmatprep.subr.bf16.mxu1 %v4629_v60  ;;  %v2909_v55 = vand.u32 4294901760, %v2908_v2  ;;  %v3711_v58 = vsub.f32 %v7403_v54, %v7210_v50  ;;  %v7214_v49 = vand.u32 4294901760, %v7405_v20  ;;  %v7217_v8 = vand.u32 4294901760, %v7406_v47  ;;  %v7408_v50 = vld [vmem:[#allocation47_spill] sm:$0xff] }
 0x271   :  { %4464 = vmatpush1.bf16.msra.mxu0 %v4463_v13  ;;  %v4631_v25 = vpack.c.bf16 %v3706_v43, %v3694_v27  ;;  %v2921_v26 = vand.u32 4294901760, %v2920_v19  ;;  %v3723_v48 = vsub.f32 %v7404_v35, %v7212_v0  ;;  %v7219_v30 = vand.u32 4294901760, %v7407_v36  ;;  %v7409_v19 = vld [vmem:[#allocation49_spill] sm:$0xff] }
 0x272   :  { %v3712_v53 = vand.u32 4294901760, %v3711_v58  ;;  %v2914_v60 = vsub.f32 %v7405_v20, %v7214_v49  ;;  %v2926_v2 = vsub.f32 %v7406_v47, %v7217_v8  ;;  %v7221_v54 = vand.u32 4294901760, %v7408_v50  ;;  %v7410_v20 = vld [vmem:[#allocation50_spill] sm:$0xff] }
 0x273   :  { %4632 = vmatpush1.bf16.msra.mxu1 %v4631_v25  ;;  %v4465_v27 = vpack.c.bf16 %v2921_v26, %v2909_v55  ;;  %v3724_v43 = vand.u32 4294901760, %v3723_v48  ;;  %v3717_v13 = vsub.f32 %v7407_v36, %v7219_v30  ;;  %v7226_v0 = vand.u32 4294901760, %v7409_v19  ;;  %v7411_v25 = vld [vmem:[#allocation51_spill] sm:$0xff] }
 0x274   :  { %v2915_v58 = vand.u32 4294901760, %v2914_v60  ;;  %v2927_v35 = vand.u32 4294901760, %v2926_v2  ;;  %v3729_v49 = vsub.f32 %v7408_v50, %v7221_v54  ;;  %v7222_v23 = vand.u32 4294901760, %v7410_v20  ;;  %v7412_v2 = vld [vmem:[#allocation53_spill] sm:$0xff] }
 0x275   :  { %4466 = vmatprep.subr.bf16.mxu0 %v4465_v27  ;;  %v4633_v8 = vpack.c.bf16 %v3724_v43, %v3712_v53  ;;  %v3718_v47 = vand.u32 4294901760, %v3717_v13  ;;  %v2932_v55 = vsub.f32 %v7409_v19, %v7226_v0  ;;  %v7223_v26 = vand.u32 4294901760, %v7411_v25 }
 0x276   :  { %v4467_v48 = vpack.c.bf16 %v2927_v35, %v2915_v58  ;;  %v3730_v30 = vand.u32 4294901760, %v3729_v49  ;;  %v2944_v60 = vsub.f32 %v7410_v20, %v7222_v23  ;;  %v7224_v36 = vand.u32 4294901760, %v7412_v2 }
 0x277   :  { %4634 = vmatprep.subr.bf16.mxu1 %v4633_v8  ;;  %v2933_v54 = vand.u32 4294901760, %v2932_v55  ;;  %v3735_v53 = vsub.f32 %v7411_v25, %v7223_v26  ;;  %v7225_v27 = vand.u32 4294901760, %v6415_v42  ;;  %v7227_v43 = vand.u32 4294901760, %v6417_v29 }
 0x278   :  { %4468 = vmatpush1.bf16.msra.mxu0 %v4467_v48  ;;  %v4635_v13 = vpack.c.bf16 %v3730_v30, %v3718_v47  ;;  %v2945_v35 = vand.u32 4294901760, %v2944_v60  ;;  %v3747_v49 = vsub.f32 %v7412_v2, %v7224_v36  ;;  %v7239_v58 = vand.u32 4294901760, %v6427_v34 }
 0x279   :  { %v3736_v23 = vand.u32 4294901760, %v3735_v53  ;;  %v2938_v8 = vsub.f32 %v6415_v42, %v7225_v27  ;;  %v2950_v55 = vsub.f32 %v6417_v29, %v7227_v43  ;;  %v7230_v26 = vand.u32 4294901760, %v6429_v52 }
 0x27a   :  { %4636 = vmatpush1.bf16.msra.mxu1 %v4635_v13  ;;  %v4469_v30 = vpack.c.bf16 %v2945_v35, %v2933_v54  ;;  %v3748_v47 = vand.u32 4294901760, %v3747_v49  ;;  %v3741_v48 = vsub.f32 %v6427_v34, %v7239_v58  ;;  %v7237_v60 = vand.u32 4294901760, %v6437_v1  ;;  %v7413_v58 = vld [vmem:[#allocation32_spill] sm:$0xff] }
 0x27b   :  { %v2939_v53 = vand.u32 4294901760, %v2938_v8  ;;  %v2951_v36 = vand.u32 4294901760, %v2950_v55  ;;  %v3753_v27 = vsub.f32 %v6429_v52, %v7230_v26  ;;  %v7231_v0 = vand.u32 4294901760, %v6439_v15 }
 0x27c   :  { %4470 = vmatprep.subr.bf16.mxu0 %v4469_v30  ;;  %v4637_v43 = vpack.c.bf16 %v3748_v47, %v3736_v23  ;;  %v3742_v29 = vand.u32 4294901760, %v3741_v48  ;;  %v2956_v54 = vsub.f32 %v6437_v1, %v7237_v60  ;;  %v7232_v13 = vand.u32 4294901760, %v6441_v61 }
 0x27d   :  { %v4471_v35 = vpack.c.bf16 %v2951_v36, %v2939_v53  ;;  %v3754_v49 = vand.u32 4294901760, %v3753_v27  ;;  %v2968_v8 = vsub.f32 %v6439_v15, %v7231_v0  ;;  %v7233_v55 = vand.u32 4294901760, %v6445_v39 }
 0x27e   :  { %4638 = vmatprep.subr.bf16.mxu1 %v4637_v43  ;;  %v2957_v26 = vand.u32 4294901760, %v2956_v54  ;;  %v3759_v23 = vsub.f32 %v6441_v61, %v7232_v13  ;;  %v7234_v30 = vand.u32 4294901760, %v6449_v22  ;;  %v7235_v47 = vand.u32 4294901760, %v6452_v45 }
 0x27f   :  { %4472 = vmatpush1.bf16.msra.mxu0 %v4471_v35  ;;  %v4639_v48 = vpack.c.bf16 %v3754_v49, %v3742_v29  ;;  %v2969_v36 = vand.u32 4294901760, %v2968_v8  ;;  %v3771_v27 = vsub.f32 %v6445_v39, %v7233_v55  ;;  %v7236_v53 = vand.u32 4294901760, %v6461_v38 }
 0x280   :  { %v3760_v0 = vand.u32 4294901760, %v3759_v23  ;;  %v2962_v43 = vsub.f32 %v6449_v22, %v7234_v30  ;;  %v2974_v54 = vsub.f32 %v6452_v45, %v7235_v47  ;;  %v7238_v13 = vand.u32 4294901760, %v6470_v37 }
 0x281   :  { %4640 = vmatpush1.bf16.msra.mxu1 %v4639_v48  ;;  %v4473_v29 = vpack.c.bf16 %v2969_v36, %v2957_v26  ;;  %v3772_v35 = vand.u32 4294901760, %v3771_v27  ;;  %v3765_v49 = vsub.f32 %v6461_v38, %v7236_v53  ;;  %v4477_v8 = vpack.c.bf16 %v6122_v9, %v6096_v16 }
 0x282   :  { %v2963_v23 = vand.u32 4294901760, %v2962_v43  ;;  %v2975_v55 = vand.u32 4294901760, %v2974_v54  ;;  %v3777_v30 = vsub.f32 %v6470_v37, %v7238_v13  ;;  %v4645_v47 = vpack.c.bf16 %v6132_v28, %v6098_v6 }
 0x283   :  { %4474 = vmatprep.subr.bf16.mxu0 %v4473_v29  ;;  %v4641_v48 = vpack.c.bf16 %v3772_v35, %v3760_v0  ;;  %v3766_v26 = vand.u32 4294901760, %v3765_v49  ;;  %v4479_v36 = vpack.c.bf16 %v6105_v63, %v6092_v57  ;;  %v4647_v27 = vpack.c.bf16 %v6112_v32, %v6094_v7 }
 0x284   :  { %v4475_v53 = vpack.c.bf16 %v2975_v55, %v2963_v23  ;;  %v3778_v60 = vand.u32 4294901760, %v3777_v30  ;;  %v4481_v43 = vpack.c.bf16 %v6159_v41, %v6144_v4  ;;  %v4649_v54 = vpack.c.bf16 %v6172_v44, %v6146_v40 }
 0x285   :  { %4642 = vmatprep.subr.bf16.mxu1 %v4641_v48  ;;  %v4483_v29 = vpack.c.bf16 %v6152_v59, %v6148_v14  ;;  %v4651_v0 = vpack.c.bf16 %v6187_v46, %v6174_v12  ;;  %v4485_v35 = vpack.c.bf16 %v6213_v17, %v6199_v24  ;;  %v4653_v55 = vpack.c.bf16 %v6228_v62, %v6201_v51  ;;  %v7414_v24 = vld [vmem:[#allocation34_spill] sm:$0xff]  ;;  %v7415_v62 = vld [vmem:[#allocation35_spill] sm:$0xff]  ;;  %v7421_v46 = vld [vmem:[#allocation44_spill] sm:$0xff] }
 0x286   :  { %4476 = vmatpush1.bf16.msra.mxu0 %v4475_v53  ;;  %v4643_v30 = vpack.c.bf16 %v3778_v60, %v3766_v26  ;;  %v4487_v49 = vpack.c.bf16 %v6230_v18, %v6203_v56  ;;  %v4655_v23 = vpack.c.bf16 %v6254_v31, %v6246_v10  ;;  %v4489_v48 = vpack.c.bf16 %v6269_v11, %v6256_v5  ;;  %v7416_v60 = vld [vmem:[#allocation36_spill] sm:$0xff]  ;;  %v7417_v26 = vld [vmem:[#allocation38_spill] sm:$0xff]  ;;  %v7418_v18 = vld [vmem:[#allocation39_spill] sm:$0xff] }
 0x287   :  { %4478 = vmatprep.subr.bf16.mxu0 %v4477_v8  ;;  %v4657_v13 = vpack.c.bf16 %v6276_v3, %v6258_v33  ;;  %v4491_v17 = vpack.c.bf16 %v7413_v58, %v6284_v21  ;;  %v4659_v53 = vpack.c.bf16 %v7415_v62, %v7414_v24  ;;  %v4493_v51 = vpack.c.bf16 %v7417_v26, %v7416_v60  ;;  %v7419_v56 = vld [vmem:[#allocation41_spill] sm:$0xff]  ;;  %v7420_v10 = vld [vmem:[#allocation42_spill] sm:$0xff] }
 0x288   :  { %4644 = vmatpush1.bf16.msra.mxu1 %v4643_v30  ;;  %v4661_v31 = vpack.c.bf16 %v7419_v56, %v7418_v18  ;;  %v4495_v11 = vpack.c.bf16 %v7421_v46, %v7420_v10  ;;  %v7422_v8 = vld [vmem:[#allocation46_spill] sm:$0xff]  ;;  %v4497_v3 = vpack.c.bf16 %v7410_v20, %v7409_v19  ;;  %v4665_v62 = vpack.c.bf16 %v7412_v2, %v7411_v25  ;;  %v7424_v30 = vld [vmem:[#allocation55_spill] sm:$0xff] }
 0x289   :  { %v4663_v5 = vpack.c.bf16 %v7408_v50, %v7422_v8  ;;  %4646 = vmatprep.subr.bf16.mxu1 %v4645_v47  ;;  %v7423_v58 = vld [vmem:[#allocation2_spill] sm:$0xff]  ;;  %v4499_v26 = vpack.c.bf16 %v7424_v30, %v6415_v42  ;;  %v4667_v56 = vpack.c.bf16 %v6429_v52, %v6427_v34  ;;  %v4501_v46 = vpack.c.bf16 %v6439_v15, %v6437_v1 }
 0x28a   :  { %3015 = vmatmul.mubr.f32.vlgmr.msra.gmra.mrb[28].mxu0 %v7423_v58  ;;  %v4669_v50 = vpack.c.bf16 %v6445_v39, %v6441_v61  ;;  %v4503_v47 = vpack.c.bf16 %v6452_v45, %v6449_v22  ;;  %v4671_v20 = vpack.c.bf16 %v6470_v37, %v6461_v38  ;;  %v7425_v30 = vand.u32 4294901760, %v6096_v16 }
 0x28b   :  { %4480 = vmatpush1.bf16.msra.mxu0 %v4479_v36  ;;  %3818 = vmatmul.mubr.f32.vlgmr.msra.gmra.mrb[28].mxu1 %v7423_v58  ;;  %v7426_v52 = vand.u32 4294901760, %v6122_v9  ;;  %v7427_v15 = vand.u32 4294901760, %v6098_v6  ;;  %v7428_v1 = vand.u32 4294901760, %v6132_v28  ;;  %v7429_v45 = vand.u32 4294901760, %v6092_v57 }
 0x28c   :  { %4482 = vmatprep.subr.bf16.mxu0 %v4481_v43  ;;  %v7430_v22 = vand.u32 4294901760, %v6105_v63  ;;  %4648 = vmatpush1.bf16.msra.mxu1 %v4647_v27  ;;  %v7431_v43 = vmov 0.0   ;;  %v7432_v16 = vand.u32 4294901760, %v6094_v7  ;;  %v7433_v9 = vand.u32 4294901760, %v6112_v32 }
 0x28d   :  { %v6754_v36 = vpack.c.bf16 %v7426_v52, %v7425_v30  ;;  %v6760_v39 = vpack.c.bf16 %v7428_v1, %v7427_v15  ;;  %3141 = vmatprep.mubr.f32.mxu0 %v7431_v43  ;;  %v7434_v6 = vand.u32 4294901760, %v6144_v4  ;;  %v7435_v28 = vand.u32 4294901760, %v6159_v41  ;;  %4650 = vmatprep.subr.bf16.mxu1 %v4649_v54  ;;  %v7441_v41 = vld [vmem:[#allocation5_spill] sm:$0xff] }
 0x28e   :  { %v6766_v37 = vpack.c.bf16 %v7430_v22, %v7429_v45  ;;  %v6773_v52 = vpack.c.bf16 %v7433_v9, %v7432_v16  ;;  %v7436_v57 = vand.u32 4294901760, %v6146_v40  ;;  %v7437_v63 = vand.u32 4294901760, %v6172_v44  ;;  %3944 = vmatprep.mubr.f32.mxu1 %v7431_v43  ;;  %v7443_v40 = vld [vmem:[#allocation7_spill] sm:$0xff]  ;;  %v7445_v44 = vld [vmem:[#allocation14_spill] sm:$0xff]  ;;  %v7447_v54 = vld [vmem:[#allocation9_spill] sm:$0xff] }
 0x28f   :  { %v6779_v1 = vpack.c.bf16 %v7435_v28, %v7434_v6  ;;  %v7438_v7 = vand.u32 4294901760, %v6148_v14  ;;  %v7439_v32 = vand.u32 4294901760, %v6152_v59  ;;  %v7440_v4 = vand.u32 4294901760, %v6174_v12  ;;  %4484 = vmatpush1.bf16.msra.mxu0 %v4483_v29  ;;  %v7449_v14 = vld [vmem:[#allocation18_spill] sm:$0xff]  ;;  %v7453_v12 = vld [vmem:[#allocation20_spill] sm:$0xff] }
 0x290   :  { %v6785_v15 = vpack.c.bf16 %v7437_v63, %v7436_v57  ;;  %v7442_v45 = vand.u32 4294901760, %v7441_v41  ;;  %v7444_v30 = vand.u32 4294901760, %v7443_v40  ;;  %v7446_v16 = vand.u32 4294901760, %v7445_v44  ;;  %v7451_v57 = vld [vmem:[#allocation11_spill] sm:$0xff]  ;;  %4486 = vmatprep.subr.bf16.mxu0 %v4485_v35  ;;  %4652 = vmatpush1.bf16.msra.mxu1 %v4651_v0 }
 0x291   :  { %v6792_v22 = vpack.c.bf16 %v7439_v32, %v7438_v7  ;;  %v7448_v6 = vand.u32 4294901760, %v7447_v54  ;;  %v7450_v28 = vand.u32 4294901760, %v7449_v14  ;;  %v7452_v63 = vand.u32 4294901760, %v7451_v57  ;;  %v7464_v14 = vld [vmem:[#allocation30_spill] sm:$0xff]  ;;  %4654 = vmatprep.subr.bf16.mxu1 %v4653_v55 }
 0x292   :  { %v6798_v27 = vpack.c.bf16 %v7442_v45, %v7440_v4  ;;  %v6804_v9 = vpack.c.bf16 %v7446_v16, %v7444_v30  ;;  %v7454_v7 = vand.u32 4294901760, %v7453_v12  ;;  %v7455_v4 = vld [vmem:[#allocation22_spill] sm:$0xff]  ;;  %v7457_v45 = vld [vmem:[#allocation25_spill] sm:$0xff]  ;;  %v7461_v16 = vld [vmem:[#allocation28_spill] sm:$0xff]  ;;  %v7472_v35 = vand.u32 4294901760, %v7416_v60 }
 0x293   :  { %v6810_v59 = vpack.c.bf16 %v7450_v28, %v7448_v6  ;;  %v7456_v41 = vand.u32 4294901760, %v7455_v4  ;;  %v7458_v40 = vand.u32 4294901760, %v7457_v45  ;;  %v7459_v30 = vld [vmem:[#allocation26_spill] sm:$0xff]  ;;  %v7462_v54 = vand.u32 4294901760, %v7461_v16  ;;  %v7467_v12 = vld [vmem:[#allocation32_spill] sm:$0xff]  ;;  %v7470_v45 = vld [vmem:[#allocation35_spill] sm:$0xff]  ;;  %4488 = vmatpush1.bf16.msra.mxu0 %v4487_v49 }
 0x294   :  { %v6816_v32 = vpack.c.bf16 %v7454_v7, %v7452_v63  ;;  %v7460_v29 = vand.u32 4294901760, %v7459_v30  ;;  %v7463_v6 = vand.u32 4294901760, %v6258_v33  ;;  %v7465_v28 = vand.u32 4294901760, %v7464_v14  ;;  %v7482_v60 = vld [vmem:[#allocation47_spill] sm:$0xff]  ;;  %4490 = vmatprep.subr.bf16.mxu0 %v4489_v48  ;;  %4656 = vmatpush1.bf16.msra.mxu1 %v4655_v23  ;;  %v7525_v48 = vld [vmem:[#allocation37_spill] sm:$0xff] }
 0x295   :  { %v6822_v44 = vpack.c.bf16 %v7458_v40, %v7456_v41  ;;  %v7466_v63 = vand.u32 4294901760, %v6284_v21  ;;  %v7468_v7 = vand.u32 4294901760, %v7467_v12  ;;  %v7469_v41 = vand.u32 4294901760, %v7414_v24  ;;  %v7476_v21 = vld [vmem:[#allocation41_spill] sm:$0xff]  ;;  %v7479_v24 = vld [vmem:[#allocation44_spill] sm:$0xff]  ;;  %4658 = vmatprep.subr.bf16.mxu1 %v4657_v13  ;;  %v7511_v49 = vld [vmem:[#allocation3_spill] sm:$0xff] }
 0x296   :  { %v6828_v58 = vpack.c.bf16 %v7462_v54, %v7460_v29  ;;  %v6834_v57 = vpack.c.bf16 %v7465_v28, %v7463_v6  ;;  %v7471_v40 = vand.u32 4294901760, %v7470_v45  ;;  %v7473_v29 = vld [vmem:[#allocation38_spill] sm:$0xff]  ;;  %v7475_v54 = vand.u32 4294901760, %v7418_v18  ;;  %v7523_v13 = vld [vmem:[#allocation29_spill] sm:$0xff]  ;;  %v7524_v23 = vld [vmem:[#allocation31_spill] sm:$0xff] }
 0x297   :  { %v6840_v4 = vpack.c.bf16 %v7468_v7, %v7466_v63  ;;  %v7474_v33 = vand.u32 4294901760, %v7473_v29  ;;  %v7477_v6 = vand.u32 4294901760, %v7476_v21  ;;  %v7478_v28 = vand.u32 4294901760, %v7420_v10  ;;  %4492 = vmatpush1.bf16.msra.mxu0 %v4491_v17  ;;  %v7512_v17 = vld [vmem:[#allocation8_spill] sm:$0xff] }
 0x298   :  { %v6846_v30 = vpack.c.bf16 %v7471_v40, %v7469_v41  ;;  %v7480_v63 = vand.u32 4294901760, %v7479_v24  ;;  %v7481_v7 = vand.u32 4294901760, %v7422_v8  ;;  %v7483_v41 = vand.u32 4294901760, %v7482_v60  ;;  %v7485_v40 = vld [vmem:[#allocation50_spill] sm:$0xff]  ;;  %v7490_v8 = vld [vmem:[#allocation55_spill] sm:$0xff]  ;;  %v7497_v60 = vld [vmem:[#allocation60_spill] sm:$0xff]  ;;  %4494 = vmatprep.subr.bf16.mxu0 %v4493_v51  ;;  %4660 = vmatpush1.bf16.msra.mxu1 %v4659_v53 }
 0x299   :  { %v6852_v16 = vpack.c.bf16 %v7474_v33, %v7472_v35  ;;  %v6858_v14 = vpack.c.bf16 %v7477_v6, %v7475_v54  ;;  %v7484_v0 = vand.u32 4294901760, %v7409_v19  ;;  %v7486_v18 = vand.u32 4294901760, %v7485_v40  ;;  %v7493_v19 = vld [vmem:[#allocation57_spill] sm:$0xff]  ;;  %4662 = vmatprep.subr.bf16.mxu1 %v4661_v31  ;;  %v7517_v31 = vld [vmem:[#allocation12_spill] sm:$0xff] }
 0x29a   :  { %v6864_v12 = vpack.c.bf16 %v7480_v63, %v7478_v28  ;;  %v6870_v45 = vpack.c.bf16 %v7483_v41, %v7481_v7  ;;  %v7487_v29 = vand.u32 4294901760, %v7411_v25  ;;  %v7488_v10 = vand.u32 4294901760, %v7412_v2  ;;  %v7495_v7 = vld [vmem:[#allocation59_spill] sm:$0xff]  ;;  %v7513_v51 = vld [vmem:[#allocation21_spill] sm:$0xff] }
 0x29b   :  { %v6876_v35 = vpack.c.bf16 %v7486_v18, %v7484_v0  ;;  %v7489_v54 = vand.u32 4294901760, %v6415_v42  ;;  %v7491_v21 = vand.u32 4294901760, %v7490_v8  ;;  %v7492_v28 = vand.u32 4294901760, %v6427_v34  ;;  %v7500_v42 = vld [vmem:[#allocation62_spill] sm:$0xff]  ;;  %v7502_v18 = vld [vmem:[#allocation64_spill] sm:$0xff]  ;;  %v7504_v34 = vld [vmem:[#allocation65_spill] sm:$0xff]  ;;  %4496 = vmatpush1.bf16.msra.mxu0 %v4495_v11 }
 0x29c   :  { %v6882_v33 = vpack.c.bf16 %v7488_v10, %v7487_v29  ;;  %v7494_v24 = vand.u32 4294901760, %v7493_v19  ;;  %v7496_v55 = vand.u32 4294901760, %v7495_v7  ;;  %v7498_v25 = vand.u32 4294901760, %v7497_v60  ;;  %4498 = vmatprep.subr.bf16.mxu0 %v4497_v3  ;;  %4664 = vmatpush1.bf16.msra.mxu1 %v4663_v5  ;;  %v7518_v5 = vld [vmem:[#allocation4_spill] sm:$0xff]  ;;  %v7519_v11 = vld [vmem:[#allocation17_spill] sm:$0xff]  ;;  %v7532_v60 = vld [vmem:[#allocation54_spill] sm:$0xff] }
 0x29d   :  { %v6888_v6 = vpack.c.bf16 %v7491_v21, %v7489_v54  ;;  %v7499_v2 = vand.u32 4294901760, %v6441_v61  ;;  %v7501_v0 = vand.u32 4294901760, %v7500_v42  ;;  %v7503_v29 = vand.u32 4294901760, %v7502_v18  ;;  %v7507_v21 = vld [vmem:[#allocation67_spill] sm:$0xff]  ;;  %4666 = vmatprep.subr.bf16.mxu1 %v4665_v62  ;;  %v7509_v61 = vld [vmem:[#allocation13_spill] sm:$0xff]  ;;  %v7514_v62 = vld [vmem:[#allocation10_spill] sm:$0xff] }
 0x29e   :  { %v6894_v63 = vpack.c.bf16 %v7494_v24, %v7492_v28  ;;  %v6900_v41 = vpack.c.bf16 %v7498_v25, %v7496_v55  ;;  %v7505_v10 = vand.u32 4294901760, %v7504_v34  ;;  %v7506_v8 = vand.u32 4294901760, %v6461_v38  ;;  %v7510_v38 = vld [vmem:[#allocation15_spill] sm:$0xff]  ;;  %v7520_v3 = vld [vmem:[#allocation16_spill] sm:$0xff]  ;;  %v7526_v53 = vld [vmem:[#allocation33_spill] sm:$0xff] }
 0x29f   :  { %v6906_v40 = vpack.c.bf16 %v7501_v0, %v7499_v2  ;;  %v7508_v28 = vand.u32 4294901760, %v7507_v21  ;;  %4500 = vmatpush1.bf16.msra.mxu0 %v4499_v26  ;;  %v7527_v26 = vld [vmem:[#allocation40_spill] sm:$0xff]  ;;  %v7530_v7 = vld [vmem:[#allocation45_spill] sm:$0xff]  ;;  %v7533_v25 = vld [vmem:[#allocation58_spill] sm:$0xff] }
 0x2a0   :  { %v6912_v54 = vpack.c.bf16 %v7505_v10, %v7503_v29  ;;  %4502 = vmatprep.subr.bf16.mxu0 %v4501_v46  ;;  %4668 = vmatpush1.bf16.msra.mxu1 %v4667_v56  ;;  %v7515_v46 = vld [vmem:[#allocation23_spill] sm:$0xff]  ;;  %v7529_v24 = vld [vmem:[#allocation48_spill] sm:$0xff]  ;;  %v7535_v42 = vld [vmem:[#allocation61_spill] sm:$0xff] }
 0x2a1   :  { %v6918_v19 = vpack.c.bf16 %v7508_v28, %v7506_v8  ;;  %4670 = vmatprep.subr.bf16.mxu1 %v4669_v50  ;;  %v7516_v56 = vld [vmem:[#allocation19_spill] sm:$0xff]  ;;  %v7531_v55 = vld [vmem:[#allocation52_spill] sm:$0xff]  ;;  %v7537_v18 = vld [vmem:[#allocation66_spill] sm:$0xff] }
 0x2a2   :  { %v7521_v50 = vld [vmem:[#allocation27_spill] sm:$0xff]  ;;  %v7534_v2 = vld [vmem:[#allocation56_spill] sm:$0xff]  ;;  %v7538_v29 = vld [vmem:[#allocation6_spill] sm:$0xff] }
 0x2a3   :  { %4504 = vmatpush1.bf16.msra.mxu0 %v4503_v47  ;;  %v7528_v47 = vld [vmem:[#allocation43_spill] sm:$0xff] }
 0x2a4   :  { %4506 = vmatprep.subr.bf16.mxu0 %v7509_v61  ;;  %4672 = vmatpush1.bf16.msra.mxu1 %v4671_v20  ;;  %v7522_v20 = vld [vmem:[#allocation24_spill] sm:$0xff]  ;;  %v7536_v0 = vld [vmem:[#allocation63_spill] sm:$0xff] }
 0x2a5   :  { %4674 = vmatprep.subr.bf16.mxu1 %v7510_v38 }
 0x2a6   :  { %3144 = vmatmul.mubr.f32.vlgmr.msra.gmra.mrb[28].mxu0 %v7511_v49 }
 0x2a7   :  { %4508 = vmatpush1.bf16.msra.mxu0 %v7512_v17  ;;  %3242 = vmatprep.mubr.f32.mxu0 %v7431_v43 }
 0x2a8   :  { %3947 = vmatmul.mubr.f32.vlgmr.msra.gmra.mrb[28].mxu1 %v7511_v49  ;;  %4510 = vmatprep.subr.bf16.mxu0 %v7513_v51 }
 0x2a9   :  { %4676 = vmatpush1.bf16.msra.mxu1 %v7514_v62  ;;  %4045 = vmatprep.mubr.f32.mxu1 %v7431_v43 }
 0x2aa   :  { %4678 = vmatprep.subr.bf16.mxu1 %v7515_v46 }
 0x2ab   :  { %4512 = vmatpush1.bf16.msra.mxu0 %v7516_v56 }
 0x2ac   :  { %4514 = vmatprep.subr.bf16.mxu0 %v7517_v31 }
 0x2ad   :  { %4680 = vmatpush1.bf16.msra.mxu1 %v7518_v5 }
 0x2ae   :  { %4682 = vmatprep.subr.bf16.mxu1 %v7519_v11 }
 0x2af   :  { %4516 = vmatpush1.bf16.msra.mxu0 %v7520_v3 }
 0x2b0   :  { %4518 = vmatprep.subr.bf16.mxu0 %v7521_v50 }
 0x2b1   :  { %4684 = vmatpush1.bf16.msra.mxu1 %v7522_v20 }
 0x2b2   :  { %4686 = vmatprep.subr.bf16.mxu1 %v7523_v13 }
 0x2b3   :  { %4520 = vmatpush1.bf16.msra.mxu0 %v7524_v23 }
 0x2b4   :  { %4522 = vmatprep.subr.bf16.mxu0 %v7525_v48 }
 0x2b5   :  { %4688 = vmatpush1.bf16.msra.mxu1 %v7526_v53 }
 0x2b6   :  { %4690 = vmatprep.subr.bf16.mxu1 %v7527_v26 }
 0x2b7   :  { %4524 = vmatpush1.bf16.msra.mxu0 %v7528_v47 }
 0x2b8   :  { %4526 = vmatprep.subr.bf16.mxu0 %v7529_v24 }
 0x2b9   :  { %4692 = vmatpush1.bf16.msra.mxu1 %v7530_v7 }
 0x2ba   :  { %4694 = vmatprep.subr.bf16.mxu1 %v7531_v55 }
 0x2bb   :  { %4528 = vmatpush1.bf16.msra.mxu0 %v7532_v60 }
 0x2bc   :  { %4530 = vmatprep.subr.bf16.mxu0 %v7533_v25 }
 0x2bd   :  { %4696 = vmatpush1.bf16.msra.mxu1 %v7534_v2 }
 0x2be   :  { %4698 = vmatprep.subr.bf16.mxu1 %v7535_v42 }
 0x2bf   :  { %4532 = vmatpush1.bf16.msra.mxu0 %v7536_v0 }
 0x2c0   :  { %4534 = vmatprep.subr.bf16.mxu0 %v6754_v36 }
 0x2c1   :  { %4700 = vmatpush1.bf16.msra.mxu1 %v7537_v18 }
 0x2c2   :  { %4702 = vmatprep.subr.bf16.mxu1 %v6760_v39  ;;  %3246 = vmatmul.mubr.f32.vlgmr.msra.gmra.mrb[28].mxu0 %v7538_v29  ;;  %v7539_v39 = vld [vmem:[#allocation2_spill] sm:$0xff] }
 0x2c3   :  { %4536 = vmatpush1.bf16.msra.mxu0 %v6766_v37  ;;  %3400 = vmatprep.mubr.f32.mxu0 %v7431_v43 }
 0x2c4   :  { %4049 = vmatmul.mubr.f32.vlgmr.msra.gmra.mrb[28].mxu1 %v7538_v29  ;;  %4538 = vmatprep.subr.bf16.mxu0 %v6779_v1 }
 0x2c5   :  { %4704 = vmatpush1.bf16.msra.mxu1 %v6773_v52  ;;  %4203 = vmatprep.mubr.f32.mxu1 %v7431_v43 }
 0x2c6   :  { %4706 = vmatprep.subr.bf16.mxu1 %v6785_v15 }
 0x2c7   :  { %4540 = vmatpush1.bf16.msra.mxu0 %v6792_v22 }
 0x2c8   :  { %4542 = vmatprep.subr.bf16.mxu0 %v6804_v9 }
 0x2c9   :  { %4708 = vmatpush1.bf16.msra.mxu1 %v6798_v27 }
 0x2ca   :  { %4710 = vmatprep.subr.bf16.mxu1 %v6810_v59 }
 0x2cb   :  { %4544 = vmatpush1.bf16.msra.mxu0 %v6816_v32 }
 0x2cc   :  { %4546 = vmatprep.subr.bf16.mxu0 %v6828_v58 }
 0x2cd   :  { %4712 = vmatpush1.bf16.msra.mxu1 %v6822_v44 }
 0x2ce   :  { %4714 = vmatprep.subr.bf16.mxu1 %v6834_v57 }
 0x2cf   :  { %4548 = vmatpush1.bf16.msra.mxu0 %v6840_v4 }
 0x2d0   :  { %4550 = vmatprep.subr.bf16.mxu0 %v6852_v16 }
 0x2d1   :  { %4716 = vmatpush1.bf16.msra.mxu1 %v6846_v30 }
 0x2d2   :  { %4718 = vmatprep.subr.bf16.mxu1 %v6858_v14 }
 0x2d3   :  { %4552 = vmatpush1.bf16.msra.mxu0 %v6864_v12 }
 0x2d4   :  { %4554 = vmatprep.subr.bf16.mxu0 %v6876_v35 }
 0x2d5   :  { %4720 = vmatpush1.bf16.msra.mxu1 %v6870_v45 }
 0x2d6   :  { %4722 = vmatprep.subr.bf16.mxu1 %v6882_v33 }
 0x2d7   :  { %4556 = vmatpush1.bf16.msra.mxu0 %v6888_v6 }
 0x2d8   :  { %4558 = vmatprep.subr.bf16.mxu0 %v6900_v41 }
 0x2d9   :  { %4724 = vmatpush1.bf16.msra.mxu1 %v6894_v63 }
 0x2da   :  { %4726 = vmatprep.subr.bf16.mxu1 %v6906_v40 }
 0x2db   :  { %4560 = vmatpush1.bf16.msra.mxu0 %v6912_v54 }
 0x2dc   :  { %4562 = vmatprep.subr.bf16.mxu0 %v7509_v61 }
 0x2dd   :  { %4728 = vmatpush1.bf16.msra.mxu1 %v6918_v19 }
 0x2de   :  { %4730 = vmatprep.subr.bf16.mxu1 %v7510_v38  ;;  %3402 = vmatmul.mubr.f32.vlgmr.msra.gmra.mrb[28].mxu0 %v7539_v39 }
 0x2df   :  { %4564 = vmatpush1.bf16.msra.mxu0 %v7512_v17  ;;  %3500 = vmatprep.mubr.f32.mxu0 %v7431_v43 }
 0x2e0   :  { %4205 = vmatmul.mubr.f32.vlgmr.msra.gmra.mrb[28].mxu1 %v7539_v39  ;;  %4566 = vmatprep.subr.bf16.mxu0 %v7513_v51 }
 0x2e1   :  { %4732 = vmatpush1.bf16.msra.mxu1 %v7514_v62  ;;  %4303 = vmatprep.mubr.f32.mxu1 %v7431_v43 }
 0x2e2   :  { %4734 = vmatprep.subr.bf16.mxu1 %v7515_v46 }
 0x2e3   :  { %4568 = vmatpush1.bf16.msra.mxu0 %v7516_v56 }
 0x2e4   :  { %4570 = vmatprep.subr.bf16.mxu0 %v7517_v31 }
 0x2e5   :  { %4736 = vmatpush1.bf16.msra.mxu1 %v7518_v5 }
 0x2e6   :  { %4738 = vmatprep.subr.bf16.mxu1 %v7519_v11 }
 0x2e7   :  { %4572 = vmatpush1.bf16.msra.mxu0 %v7520_v3 }
 0x2e8   :  { %4574 = vmatprep.subr.bf16.mxu0 %v7521_v50 }
 0x2e9   :  { %4740 = vmatpush1.bf16.msra.mxu1 %v7522_v20 }
 0x2ea   :  { %4742 = vmatprep.subr.bf16.mxu1 %v7523_v13 }
 0x2eb   :  { %4576 = vmatpush1.bf16.msra.mxu0 %v7524_v23 }
 0x2ec   :  { %4578 = vmatprep.subr.bf16.mxu0 %v7525_v48 }
 0x2ed   :  { %4744 = vmatpush1.bf16.msra.mxu1 %v7526_v53 }
 0x2ee   :  { %4746 = vmatprep.subr.bf16.mxu1 %v7527_v26 }
 0x2ef   :  { %4580 = vmatpush1.bf16.msra.mxu0 %v7528_v47 }
 0x2f0   :  { %4582 = vmatprep.subr.bf16.mxu0 %v7529_v24 }
 0x2f1   :  { %4748 = vmatpush1.bf16.msra.mxu1 %v7530_v7 }
 0x2f2   :  { %4750 = vmatprep.subr.bf16.mxu1 %v7531_v55 }
 0x2f3   :  { %4584 = vmatpush1.bf16.msra.mxu0 %v7532_v60 }
 0x2f4   :  { %4586 = vmatprep.subr.bf16.mxu0 %v7533_v25 }
 0x2f5   :  { %4752 = vmatpush1.bf16.msra.mxu1 %v7534_v2 }
 0x2f6   :  { %4754 = vmatprep.subr.bf16.mxu1 %v7535_v42 }
 0x2f7   :  { %4588 = vmatpush1.bf16.msra.mxu0 %v7536_v0 }
 0x2f9   :  { %4756 = vmatpush1.bf16.msra.mxu1 %v7537_v18 }
 0x2fa   :  { %3502 = vmatmul.mubr.f32.vlgmr.msra.gmra.mrb[28].mxu0 %v7539_v39 }
 0x2fc   :  { %4305 = vmatmul.mubr.f32.vlgmr.msra.gmra.mrb[28].mxu1 %v7539_v39 }
 0x3cd   :  { %v3503_v37 = vpop.f32.mrb[28].mxu0 }
 0x3ce   :  { %v3505_v58 = vpop.f32.mrb[29].mxu0 }
 0x3cf   :  { %v4306_v36 = vpop.f32.mrb[28].mxu1  ;;  %v4315_v43 = vcombine.low %v3503_v37, %v3505_v58 }
 0x3d0   :  { %v4308_v52 = vpop.f32.mrb[29].mxu1 }
 0x3d1   :  { %4319 = vst [vmem:[%s7028_s4] sm:$0x77] %v4315_v43  ;;  %v4316_v1 = vcombine.low %v4306_v36, %v4308_v52 }
 0x3d3   :  { %4320 = vst [vmem:[%s7028_s4 + $0x8] sm:$0x77] %v4316_v1 }

</bundles_post_ra>
